<compile_context>
chip_gen: v7x
topology: tpu7x:2x2x1
jax: 0.10.0
libtpu: 0.0.40
codegen_flags: <defaults>
</compile_context>

<pallas_src>
from functools import partial

import jax
import jax.numpy as jnp
from jax import lax
from jax.experimental import pallas as pl
from jax.experimental.pallas import tpu as pltpu

LANE = 128
SUBLANE = 8
NEG_BIG = -1e30  # f32 bias for padded logit lanes -> exp() underflows to exactly 0


def _round_up(x, m):
    return (x + m - 1) // m * m


# --------------------------------------------------------------------------- #
# Kernel
# --------------------------------------------------------------------------- #
def rnn_seq_kernel(h0_ref, x_ref, wi_ref, wh_ref, brec_ref, wout_ref, bout_ref,
                   out_ref, h_ref):
    """One grid step == TT timesteps of the recurrence for one batch block.

    grid = (batch_blocks, time_blocks).  The running hidden state is the
    VMEM-resident output block `h_ref` (constant block index along time).
    """
    tb = pl.program_id(1)

    # Initialize the recurrent state from h0 at the first time block.
    @pl.when(tb == 0)
    def _():
        h_ref[...] = h0_ref[...]

    TT, BB, _ = x_ref.shape
    HP = wh_ref.shape[0]
    OP = wout_ref.shape[1]

    # Hoist resident-weight loads and bias broadcasts out of the unrolled loop
    # (JAX does not CSE broadcast_in_dim; unrolling would emit TT copies).
    wi = wi_ref[...]                                        # (IP, HP) bf16
    wh = wh_ref[...]                                        # (HP, HP) bf16
    w_out = wout_ref[...]                                   # (HP, OP) bf16
    b_rec = jnp.broadcast_to(brec_ref[...], (BB, HP))       # f32
    b_out = jnp.broadcast_to(bout_ref[...], (BB, OP))       # f32 (-1e30 pad lanes)

    def step(tt, h):
        # Two accumulating MXU dots (bf16 operands, f32 acc); no lane concat.
        pre = (jnp.dot(x_ref[tt], wi, preferred_element_type=jnp.float32)
               + jnp.dot(h.astype(jnp.bfloat16), wh,
                         preferred_element_type=jnp.float32)
               + b_rec)
        h_new = jnp.tanh(pre)                               # f32 activations (v5e-safe)

        # h2o + log_softmax over dim=1.  Padded lanes carry -1e30 -> exact no-op.
        logits = jnp.dot(h_new.astype(jnp.bfloat16), w_out,
                         preferred_element_type=jnp.float32) + b_out
        m = jnp.max(logits, axis=1, keepdims=True)
        shifted = logits - m
        lse = jnp.log(jnp.sum(jnp.exp(shifted), axis=1, keepdims=True))
        out_ref[tt] = (shifted - lse).astype(out_ref.dtype)
        return h_new

    # Short fixed trip-count loop over the TT timesteps in this block.
    h_ref[...] = lax.fori_loop(0, TT, step, h_ref[...], unroll=True)


# --------------------------------------------------------------------------- #
# Parameter preparation (one-time; not per forward call)
# --------------------------------------------------------------------------- #
def prepare_params(w_i2h, b_i2h, w_h2h, b_h2h, w_h2o, b_h2o):
    """Pad + pack the Linear parameters once (zero padding is exact)."""
    I, H = w_i2h.shape
    O = w_h2o.shape[1]
    IP, HP, OP = _round_up(I, LANE), _round_up(H, LANE), _round_up(O, LANE)

    wi = jnp.zeros((IP, HP), jnp.float32).at[:I, :H].set(w_i2h).astype(jnp.bfloat16)
    wh = jnp.zeros((HP, HP), jnp.float32).at[:H, :H].set(w_h2h).astype(jnp.bfloat16)
    # Fused recurrent bias (b_i2h + b_h2h); stays f32.
    b_rec = jnp.zeros((1, HP), jnp.float32).at[:, :H].set(b_i2h + b_h2h)

    w_out = (jnp.zeros((HP, OP), jnp.float32).at[:H, :O].set(w_h2o)
             .astype(jnp.bfloat16))
    # b_out MUST stay f32 so the -1e30 padded-lane bias never overflows to -inf.
    b_out = jnp.full((1, OP), NEG_BIG, jnp.float32).at[:, :O].set(b_h2o)

    return (wi, wh, b_rec, w_out, b_out)


# --------------------------------------------------------------------------- #
# Forward wrappers
# --------------------------------------------------------------------------- #
@partial(jax.jit, static_argnames=("hidden_size", "output_size"))
def rnn_forward_sequence(xs, h0, prepared, *, hidden_size, output_size):
    """Run the RNN over a sequence xs: (T, B, I) with initial hidden h0: (B, H).

    Returns (outputs (T, B, O) log-probs, final hidden (B, H)).
    """
    wi, wh, b_rec, w_out, b_out = prepared
    T, B, I = xs.shape
    IP, HP = wi.shape
    OP = w_out.shape[1]
    H, O = hidden_size, output_size

    # --- batch blocking: pad B to a multiple of 8, grow BB up to 128 rows ---
    BP = _round_up(B, SUBLANE)
    if BP <= 128:
        BB = BP
    else:
        BB = 128                      # >=2 blocks -> v7x megacore sharding
        BP = _round_up(BP, BB)

    # --- time blocking: largest divisor of T up to 32 timesteps per grid step ---
    TT = 1
    for d in range(min(T, 32), 0, -1):
        if T % d == 0:
            TT = d
            break

    # --- pad activations (only this is per-call work) ---
    xs_p = (jnp.zeros((T, BP, IP), jnp.bfloat16)
            .at[:, :B, :I].set(xs.astype(jnp.bfloat16)))
    h0_p = jnp.zeros((BP, HP), jnp.float32).at[:B, :H].set(h0)

    # --- VMEM budget from actual block sums (weights single-buffered) ---
    weight_bytes = 2 * (IP * HP + HP * HP + HP * OP)      # bf16, Buffered(1)
    bias_bytes = 4 * (HP + OP)
    x_bytes = 2 * (2 * TT * BB * IP)                      # bf16, double-buffered
    out_bytes = 2 * (4 * TT * BB * OP)                    # f32, double-buffered
    h_bytes = 2 * 2 * (4 * BB * HP)                       # h0 in + h out, f32
    needed = weight_bytes + bias_bytes + x_bytes + out_bytes + h_bytes
    vmem_limit = min(64 << 20, max(32 << 20, int(needed * 1.25) + (1 << 20)))

    grid = (BP // BB, T // TT)
    const_idx = lambda b, t: (0, 0)

    out_p, h_p = pl.pallas_call(
        rnn_seq_kernel,
        out_shape=(
            # TODO(synk): optionally emit bf16 log-probs to halve the only
            # T-scaling HBM stream if downstream tolerates ~1e-3 error.
            jax.ShapeDtypeStruct((T, BP, OP), jnp.float32),
            jax.ShapeDtypeStruct((BP, HP), jnp.float32),
        ),
        grid=grid,
        in_specs=[
            pl.BlockSpec((BB, HP), lambda b, t: (b, 0)),          # h0
            pl.BlockSpec((TT, BB, IP), lambda b, t: (t, b, 0)),   # x time block
            pl.BlockSpec((IP, HP), const_idx,
                         pipeline_mode=pl.Buffered(1)),           # W_i2h (resident)
            pl.BlockSpec((HP, HP), const_idx,
                         pipeline_mode=pl.Buffered(1)),           # W_h2h (resident)
            pl.BlockSpec((1, HP), const_idx,
                         pipeline_mode=pl.Buffered(1)),           # fused bias
            pl.BlockSpec((HP, OP), const_idx,
                         pipeline_mode=pl.Buffered(1)),           # W_h2o (resident)
            pl.BlockSpec((1, OP), const_idx,
                         pipeline_mode=pl.Buffered(1)),           # b_h2o (-1e30 pad)
        ],
        out_specs=(
            pl.BlockSpec((TT, BB, OP), lambda b, t: (t, b, 0)),   # per-step log-probs
            pl.BlockSpec((BB, HP), lambda b, t: (b, 0)),          # running/final hidden
        ),
        input_output_aliases={0: 1},  # reuse the h0 buffer for the final hidden
        compiler_params=pltpu.CompilerParams(
            dimension_semantics=("parallel", "arbitrary"),
            vmem_limit_bytes=vmem_limit),
    )(h0_p, xs_p, wi, wh, b_rec, w_out, b_out)

    return out_p[:, :B, :O], h_p[:B, :H]


def rnn_forward(x, h, prepared, *, hidden_size, output_size):
    """Single-step forward matching the PyTorch module: (output, hidden)."""
    out, h_new = rnn_forward_sequence(x[None], h, prepared,
                                      hidden_size=hidden_size,
                                      output_size=output_size)
    return out[0], h_new


# --------------------------------------------------------------------------- #
# Pure-JAX reference (mirrors kernel numerics: bf16 matmuls, f32 accumulation)
# --------------------------------------------------------------------------- #
def rnn_reference_sequence(xs, h0, w_i2h, b_i2h, w_h2h, b_h2h, w_h2o, b_h2o):
    def bf16_dot(a, w):
        return jnp.dot(a.astype(jnp.bfloat16), w.astype(jnp.bfloat16),
                       preferred_element_type=jnp.float32)
    h = h0
    outs = []
    for t in range(xs.shape[0]):
        h = jnp.tanh(bf16_dot(xs[t], w_i2h) + bf16_dot(h, w_h2h)
                     + (b_i2h + b_h2h))
        outs.append(jax.nn.log_softmax(bf16_dot(h, w_h2o) + b_h2o, axis=1))
    return jnp.stack(outs), h


def init_linear_params(key, fan_in, fan_out):
    """PyTorch nn.Linear-style init: U(-1/sqrt(fan_in), 1/sqrt(fan_in)).
    Weight returned pre-transposed as (fan_in, fan_out)."""
    kw, kb = jax.random.split(key)
    bound = 1.0 / jnp.sqrt(jnp.float32(fan_in))
    w = jax.random.uniform(kw, (fan_in, fan_out), jnp.float32, -bound, bound)
    b = jax.random.uniform(kb, (1, fan_out), jnp.float32, -bound, bound)
    return w, b


if __name__ == "__main__":
    input_size, hidden_size, output_size = 16, 32, 8
    batch, seq = 8, 8

    key = jax.random.PRNGKey(0)
    k_x, k_h, k_i2h, k_h2h, k_h2o = jax.random.split(key, 5)

    xs = jax.random.normal(k_x, (seq, batch, input_size), jnp.float32)
    h0 = jax.random.normal(k_h, (batch, hidden_size), jnp.float32)

    w_i2h, b_i2h = init_linear_params(k_i2h, input_size, hidden_size)
    w_h2h, b_h2h = init_linear_params(k_h2h, hidden_size, hidden_size)
    w_h2o, b_h2o = init_linear_params(k_h2o, hidden_size, output_size)
    raw_params = (w_i2h, b_i2h, w_h2h, b_h2h, w_h2o, b_h2o)

    # One-time parameter padding / packing (not per forward call).
    prepared = prepare_params(*raw_params)
    jax.block_until_ready(prepared)

    # Fused full-sequence kernel call.
    out_seq, h_final = rnn_forward_sequence(
        xs, h0, prepared, hidden_size=hidden_size, output_size=output_size)
    jax.block_until_ready((out_seq, h_final))

    # Single-step call preserving the module's forward(input, hidden) semantics.
    out_step, h_step = rnn_forward(
        xs[0], h0, prepared, hidden_size=hidden_size, output_size=output_size)
    jax.block_until_ready((out_step, h_step))

    # Ragged batch (B not a multiple of 8) exercises the batch-padding path.
    xs_r, h0_r = xs[:, :5], h0[:5]
    out_r, h_r = rnn_forward_sequence(
        xs_r, h0_r, prepared, hidden_size=hidden_size, output_size=output_size)
    jax.block_until_ready((out_r, h_r))

    # Pure-JAX references.
    out_ref_seq, h_ref_seq = rnn_reference_sequence(xs, h0, *raw_params)
    out_ref_1, h_ref_1 = rnn_reference_sequence(xs[:1], h0, *raw_params)
    out_ref_r, h_ref_r = rnn_reference_sequence(xs_r, h0_r, *raw_params)

    tol = dict(atol=2e-4, rtol=2e-4)
    ok = (
        jnp.allclose(out_seq, out_ref_seq, **tol)
        and jnp.allclose(h_final, h_ref_seq, **tol)
        and jnp.allclose(out_step, out_ref_1[0], **tol)
        and jnp.allclose(h_step, h_ref_1, **tol)
        and jnp.allclose(out_r, out_ref_r, **tol)
        and jnp.allclose(h_r, h_ref_r, **tol)
    )
    if ok:
        print("KERNEL_OK")
    else:
        print("MISMATCH")
</pallas_src>

<mosaic_0001>
module attributes {stable_mosaic.version = 11 : i64} {
  func.func @rnn_seq_kernel(%arg0: i32, %arg1: i32, %arg2: memref<8x128xf32, #tpu.memory_space<vmem>>, %arg3: memref<8x8x128xbf16, #tpu.memory_space<vmem>>, %arg4: memref<128x128xbf16, #tpu.memory_space<vmem>>, %arg5: memref<128x128xbf16, #tpu.memory_space<vmem>>, %arg6: memref<1x128xf32, #tpu.memory_space<vmem>>, %arg7: memref<128x128xbf16, #tpu.memory_space<vmem>>, %arg8: memref<1x128xf32, #tpu.memory_space<vmem>>, %arg9: memref<8x8x128xf32, #tpu.memory_space<vmem>>, %arg10: memref<8x128xf32, #tpu.memory_space<vmem>>) attributes {dimension_semantics = [#tpu.dimension_semantics<parallel>, #tpu.dimension_semantics<arbitrary>], iteration_bounds = array<i64: 1, 1>, scalar_prefetch = 0 : i64, scratch_operands = 0 : i64, tpu.core_type = #tpu.core_type<tc>, window_params = [{transform_indices = @transform_0, window_bounds = array<i64: 8, 128>}, {transform_indices = @transform_1, window_bounds = array<i64: 8, 8, 128>}, {pipeline_mode = #tpu.pipeline_mode<synchronous>, transform_indices = @transform_2, window_bounds = array<i64: 128, 128>}, {pipeline_mode = #tpu.pipeline_mode<synchronous>, transform_indices = @transform_3, window_bounds = array<i64: 128, 128>}, {pipeline_mode = #tpu.pipeline_mode<synchronous>, transform_indices = @transform_4, window_bounds = array<i64: 1, 128>}, {pipeline_mode = #tpu.pipeline_mode<synchronous>, transform_indices = @transform_5, window_bounds = array<i64: 128, 128>}, {pipeline_mode = #tpu.pipeline_mode<synchronous>, transform_indices = @transform_6, window_bounds = array<i64: 1, 128>}, {transform_indices = @transform_7, window_bounds = array<i64: 8, 8, 128>}, {transform_indices = @transform_8, window_bounds = array<i64: 8, 128>}]} {
    %c0_i32 = arith.constant 0 : i32
    %0 = arith.cmpi eq, %arg1, %c0_i32 : i32
    %1 = arith.extui %0 : i1 to i32
    %c0_i32_0 = arith.constant 0 : i32
    %2 = arith.cmpi ne, %1, %c0_i32_0 : i32
    scf.if %2 {
      %c0_86 = arith.constant 0 : index
      %c0_87 = arith.constant 0 : index
      %222 = vector.load %arg2[%c0_86, %c0_87] : memref<8x128xf32, #tpu.memory_space<vmem>>, vector<8x128xf32>
      %c0_88 = arith.constant 0 : index
      %c0_89 = arith.constant 0 : index
      %223 = vector.load %arg10[%c0_88, %c0_89] : memref<8x128xf32, #tpu.memory_space<vmem>>, vector<8x128xf32>
      tpu.vector_store %arg10[%c0_88, %c0_89], %222 {strides = array<i32>} : memref<8x128xf32, #tpu.memory_space<vmem>>, vector<8x128xf32>,
    } else {
    }
    %c0 = arith.constant 0 : index
    %c0_1 = arith.constant 0 : index
    %3 = vector.load %arg4[%c0, %c0_1] : memref<128x128xbf16, #tpu.memory_space<vmem>>, vector<128x128xbf16>
    %c0_2 = arith.constant 0 : index
    %c0_3 = arith.constant 0 : index
    %4 = vector.load %arg5[%c0_2, %c0_3] : memref<128x128xbf16, #tpu.memory_space<vmem>>, vector<128x128xbf16>
    %c0_4 = arith.constant 0 : index
    %c0_5 = arith.constant 0 : index
    %5 = vector.load %arg7[%c0_4, %c0_5] : memref<128x128xbf16, #tpu.memory_space<vmem>>, vector<128x128xbf16>
    %c0_6 = arith.constant 0 : index
    %c0_7 = arith.constant 0 : index
    %6 = vector.load %arg6[%c0_6, %c0_7] : memref<1x128xf32, #tpu.memory_space<vmem>>, vector<1x128xf32>
    %7 = vector.shape_cast %6 : vector<1x128xf32> to vector<1x128xf32>
    %8 = vector.broadcast %7 : vector<1x128xf32> to vector<8x128xf32>
    %c0_8 = arith.constant 0 : index
    %c0_9 = arith.constant 0 : index
    %9 = vector.load %arg8[%c0_8, %c0_9] : memref<1x128xf32, #tpu.memory_space<vmem>>, vector<1x128xf32>
    %10 = vector.shape_cast %9 : vector<1x128xf32> to vector<1x128xf32>
    %11 = vector.broadcast %10 : vector<1x128xf32> to vector<8x128xf32>
    %c0_10 = arith.constant 0 : index
    %c0_11 = arith.constant 0 : index
    %12 = vector.load %arg10[%c0_10, %c0_11] : memref<8x128xf32, #tpu.memory_space<vmem>>, vector<8x128xf32>
    %c0_i32_12 = arith.constant 0 : i32
    %13 = arith.index_cast %c0_i32_12 : i32 to index
    %c0_13 = arith.constant 0 : index
    %c0_14 = arith.constant 0 : index
    %14 = vector.load %arg3[%13, %c0_13, %c0_14] : memref<8x8x128xbf16, #tpu.memory_space<vmem>>, vector<1x8x128xbf16>
    %15 = vector.shape_cast %14 : vector<1x8x128xbf16> to vector<8x128xbf16>
    %cst = arith.constant dense<0.000000e+00> : vector<8x128xf32>
    %16 = tpu.matmul %15, %3, %cst {dimension_numbers = #tpu.dot_dimension_numbers<[1], [0], [0], [1], [0, 0, 1, 1], [], []>} : vector<8x128xbf16>, vector<128x128xbf16>, vector<8x128xf32> -> vector<8x128xf32>
    %17 = arith.truncf %12 : vector<8x128xf32> to vector<8x128xbf16>
    %cst_15 = arith.constant dense<0.000000e+00> : vector<8x128xf32>
    %18 = tpu.matmul %17, %4, %cst_15 {dimension_numbers = #tpu.dot_dimension_numbers<[1], [0], [0], [1], [0, 0, 1, 1], [], []>} : vector<8x128xbf16>, vector<128x128xbf16>, vector<8x128xf32> -> vector<8x128xf32>
    %19 = arith.addf %16, %18 : vector<8x128xf32>
    %20 = arith.addf %19, %8 : vector<8x128xf32>
    %21 = math.tanh %20 : vector<8x128xf32>
    %22 = arith.truncf %21 : vector<8x128xf32> to vector<8x128xbf16>
    %cst_16 = arith.constant dense<0.000000e+00> : vector<8x128xf32>
    %23 = tpu.matmul %22, %5, %cst_16 {dimension_numbers = #tpu.dot_dimension_numbers<[1], [0], [0], [1], [0, 0, 1, 1], [], []>} : vector<8x128xbf16>, vector<128x128xbf16>, vector<8x128xf32> -> vector<8x128xf32>
    %24 = arith.addf %23, %11 : vector<8x128xf32>
    %cst_17 = arith.constant dense<0xFF800000> : vector<8xf32>
    %25 = vector.multi_reduction <maximumf>, %24, %cst_17 [1] : vector<8x128xf32> to vector<8xf32>
    %26 = vector.shape_cast %25 : vector<8xf32> to vector<8x1xf32>
    %27 = vector.broadcast %26 : vector<8x1xf32> to vector<8x128xf32>
    %28 = arith.subf %24, %27 : vector<8x128xf32>
    %29 = math.exp %28 : vector<8x128xf32>
    %cst_18 = arith.constant dense<0.000000e+00> : vector<8xf32>
    %30 = vector.multi_reduction <add>, %29, %cst_18 [1] : vector<8x128xf32> to vector<8xf32>
    %31 = vector.shape_cast %30 : vector<8xf32> to vector<8x1xf32>
    %32 = math.log %31 : vector<8x1xf32>
    %33 = vector.broadcast %32 : vector<8x1xf32> to vector<8x128xf32>
    %34 = arith.subf %28, %33 : vector<8x128xf32>
    %35 = arith.index_cast %c0_i32_12 : i32 to index
    %c0_19 = arith.constant 0 : index
    %c0_20 = arith.constant 0 : index
    %36 = vector.load %arg9[%35, %c0_19, %c0_20] : memref<8x8x128xf32, #tpu.memory_space<vmem>>, vector<1x8x128xf32>
    %37 = vector.shape_cast %36 : vector<1x8x128xf32> to vector<8x128xf32>
    %38 = vector.shape_cast %34 : vector<8x128xf32> to vector<1x8x128xf32>
    tpu.vector_store %arg9[%35, %c0_19, %c0_20], %38 {strides = array<i32>} : memref<8x8x128xf32, #tpu.memory_space<vmem>>, vector<1x8x128xf32>,
    %c1_i32 = arith.constant 1 : i32
    %39 = arith.index_cast %c1_i32 : i32 to index
    %c0_21 = arith.constant 0 : index
    %c0_22 = arith.constant 0 : index
    %40 = vector.load %arg3[%39, %c0_21, %c0_22] : memref<8x8x128xbf16, #tpu.memory_space<vmem>>, vector<1x8x128xbf16>
    %41 = vector.shape_cast %40 : vector<1x8x128xbf16> to vector<8x128xbf16>
    %cst_23 = arith.constant dense<0.000000e+00> : vector<8x128xf32>
    %42 = tpu.matmul %41, %3, %cst_23 {dimension_numbers = #tpu.dot_dimension_numbers<[1], [0], [0], [1], [0, 0, 1, 1], [], []>} : vector<8x128xbf16>, vector<128x128xbf16>, vector<8x128xf32> -> vector<8x128xf32>
    %43 = arith.truncf %21 : vector<8x128xf32> to vector<8x128xbf16>
    %cst_24 = arith.constant dense<0.000000e+00> : vector<8x128xf32>
    %44 = tpu.matmul %43, %4, %cst_24 {dimension_numbers = #tpu.dot_dimension_numbers<[1], [0], [0], [1], [0, 0, 1, 1], [], []>} : vector<8x128xbf16>, vector<128x128xbf16>, vector<8x128xf32> -> vector<8x128xf32>
    %45 = arith.addf %42, %44 : vector<8x128xf32>
    %46 = arith.addf %45, %8 : vector<8x128xf32>
    %47 = math.tanh %46 : vector<8x128xf32>
    %48 = arith.truncf %47 : vector<8x128xf32> to vector<8x128xbf16>
    %cst_25 = arith.constant dense<0.000000e+00> : vector<8x128xf32>
    %49 = tpu.matmul %48, %5, %cst_25 {dimension_numbers = #tpu.dot_dimension_numbers<[1], [0], [0], [1], [0, 0, 1, 1], [], []>} : vector<8x128xbf16>, vector<128x128xbf16>, vector<8x128xf32> -> vector<8x128xf32>
    %50 = arith.addf %49, %11 : vector<8x128xf32>
    %cst_26 = arith.constant dense<0xFF800000> : vector<8xf32>
    %51 = vector.multi_reduction <maximumf>, %50, %cst_26 [1] : vector<8x128xf32> to vector<8xf32>
    %52 = vector.shape_cast %51 : vector<8xf32> to vector<8x1xf32>
    %53 = vector.broadcast %52 : vector<8x1xf32> to vector<8x128xf32>
    %54 = arith.subf %50, %53 : vector<8x128xf32>
    %55 = math.exp %54 : vector<8x128xf32>
    %cst_27 = arith.constant dense<0.000000e+00> : vector<8xf32>
    %56 = vector.multi_reduction <add>, %55, %cst_27 [1] : vector<8x128xf32> to vector<8xf32>
    %57 = vector.shape_cast %56 : vector<8xf32> to vector<8x1xf32>
    %58 = math.log %57 : vector<8x1xf32>
    %59 = vector.broadcast %58 : vector<8x1xf32> to vector<8x128xf32>
    %60 = arith.subf %54, %59 : vector<8x128xf32>
    %61 = arith.index_cast %c1_i32 : i32 to index
    %c0_28 = arith.constant 0 : index
    %c0_29 = arith.constant 0 : index
    %62 = vector.load %arg9[%61, %c0_28, %c0_29] : memref<8x8x128xf32, #tpu.memory_space<vmem>>, vector<1x8x128xf32>
    %63 = vector.shape_cast %62 : vector<1x8x128xf32> to vector<8x128xf32>
    %64 = vector.shape_cast %60 : vector<8x128xf32> to vector<1x8x128xf32>
    tpu.vector_store %arg9[%61, %c0_28, %c0_29], %64 {strides = array<i32>} : memref<8x8x128xf32, #tpu.memory_space<vmem>>, vector<1x8x128xf32>,
    %c2_i32 = arith.constant 2 : i32
    %65 = arith.index_cast %c2_i32 : i32 to index
    %c0_30 = arith.constant 0 : index
    %c0_31 = arith.constant 0 : index
    %66 = vector.load %arg3[%65, %c0_30, %c0_31] : memref<8x8x128xbf16, #tpu.memory_space<vmem>>, vector<1x8x128xbf16>
    %67 = vector.shape_cast %66 : vector<1x8x128xbf16> to vector<8x128xbf16>
    %cst_32 = arith.constant dense<0.000000e+00> : vector<8x128xf32>
    %68 = tpu.matmul %67, %3, %cst_32 {dimension_numbers = #tpu.dot_dimension_numbers<[1], [0], [0], [1], [0, 0, 1, 1], [], []>} : vector<8x128xbf16>, vector<128x128xbf16>, vector<8x128xf32> -> vector<8x128xf32>
    %69 = arith.truncf %47 : vector<8x128xf32> to vector<8x128xbf16>
    %cst_33 = arith.constant dense<0.000000e+00> : vector<8x128xf32>
    %70 = tpu.matmul %69, %4, %cst_33 {dimension_numbers = #tpu.dot_dimension_numbers<[1], [0], [0], [1], [0, 0, 1, 1], [], []>} : vector<8x128xbf16>, vector<128x128xbf16>, vector<8x128xf32> -> vector<8x128xf32>
    %71 = arith.addf %68, %70 : vector<8x128xf32>
    %72 = arith.addf %71, %8 : vector<8x128xf32>
    %73 = math.tanh %72 : vector<8x128xf32>
    %74 = arith.truncf %73 : vector<8x128xf32> to vector<8x128xbf16>
    %cst_34 = arith.constant dense<0.000000e+00> : vector<8x128xf32>
    %75 = tpu.matmul %74, %5, %cst_34 {dimension_numbers = #tpu.dot_dimension_numbers<[1], [0], [0], [1], [0, 0, 1, 1], [], []>} : vector<8x128xbf16>, vector<128x128xbf16>, vector<8x128xf32> -> vector<8x128xf32>
    %76 = arith.addf %75, %11 : vector<8x128xf32>
    %cst_35 = arith.constant dense<0xFF800000> : vector<8xf32>
    %77 = vector.multi_reduction <maximumf>, %76, %cst_35 [1] : vector<8x128xf32> to vector<8xf32>
    %78 = vector.shape_cast %77 : vector<8xf32> to vector<8x1xf32>
    %79 = vector.broadcast %78 : vector<8x1xf32> to vector<8x128xf32>
    %80 = arith.subf %76, %79 : vector<8x128xf32>
    %81 = math.exp %80 : vector<8x128xf32>
    %cst_36 = arith.constant dense<0.000000e+00> : vector<8xf32>
    %82 = vector.multi_reduction <add>, %81, %cst_36 [1] : vector<8x128xf32> to vector<8xf32>
    %83 = vector.shape_cast %82 : vector<8xf32> to vector<8x1xf32>
    %84 = math.log %83 : vector<8x1xf32>
    %85 = vector.broadcast %84 : vector<8x1xf32> to vector<8x128xf32>
    %86 = arith.subf %80, %85 : vector<8x128xf32>
    %87 = arith.index_cast %c2_i32 : i32 to index
    %c0_37 = arith.constant 0 : index
    %c0_38 = arith.constant 0 : index
    %88 = vector.load %arg9[%87, %c0_37, %c0_38] : memref<8x8x128xf32, #tpu.memory_space<vmem>>, vector<1x8x128xf32>
    %89 = vector.shape_cast %88 : vector<1x8x128xf32> to vector<8x128xf32>
    %90 = vector.shape_cast %86 : vector<8x128xf32> to vector<1x8x128xf32>
    tpu.vector_store %arg9[%87, %c0_37, %c0_38], %90 {strides = array<i32>} : memref<8x8x128xf32, #tpu.memory_space<vmem>>, vector<1x8x128xf32>,
    %c3_i32 = arith.constant 3 : i32
    %91 = arith.index_cast %c3_i32 : i32 to index
    %c0_39 = arith.constant 0 : index
    %c0_40 = arith.constant 0 : index
    %92 = vector.load %arg3[%91, %c0_39, %c0_40] : memref<8x8x128xbf16, #tpu.memory_space<vmem>>, vector<1x8x128xbf16>
    %93 = vector.shape_cast %92 : vector<1x8x128xbf16> to vector<8x128xbf16>
    %cst_41 = arith.constant dense<0.000000e+00> : vector<8x128xf32>
    %94 = tpu.matmul %93, %3, %cst_41 {dimension_numbers = #tpu.dot_dimension_numbers<[1], [0], [0], [1], [0, 0, 1, 1], [], []>} : vector<8x128xbf16>, vector<128x128xbf16>, vector<8x128xf32> -> vector<8x128xf32>
    %95 = arith.truncf %73 : vector<8x128xf32> to vector<8x128xbf16>
    %cst_42 = arith.constant dense<0.000000e+00> : vector<8x128xf32>
    %96 = tpu.matmul %95, %4, %cst_42 {dimension_numbers = #tpu.dot_dimension_numbers<[1], [0], [0], [1], [0, 0, 1, 1], [], []>} : vector<8x128xbf16>, vector<128x128xbf16>, vector<8x128xf32> -> vector<8x128xf32>
    %97 = arith.addf %94, %96 : vector<8x128xf32>
    %98 = arith.addf %97, %8 : vector<8x128xf32>
    %99 = math.tanh %98 : vector<8x128xf32>
    %100 = arith.truncf %99 : vector<8x128xf32> to vector<8x128xbf16>
    %cst_43 = arith.constant dense<0.000000e+00> : vector<8x128xf32>
    %101 = tpu.matmul %100, %5, %cst_43 {dimension_numbers = #tpu.dot_dimension_numbers<[1], [0], [0], [1], [0, 0, 1, 1], [], []>} : vector<8x128xbf16>, vector<128x128xbf16>, vector<8x128xf32> -> vector<8x128xf32>
    %102 = arith.addf %101, %11 : vector<8x128xf32>
    %cst_44 = arith.constant dense<0xFF800000> : vector<8xf32>
    %103 = vector.multi_reduction <maximumf>, %102, %cst_44 [1] : vector<8x128xf32> to vector<8xf32>
    %104 = vector.shape_cast %103 : vector<8xf32> to vector<8x1xf32>
    %105 = vector.broadcast %104 : vector<8x1xf32> to vector<8x128xf32>
    %106 = arith.subf %102, %105 : vector<8x128xf32>
    %107 = math.exp %106 : vector<8x128xf32>
    %cst_45 = arith.constant dense<0.000000e+00> : vector<8xf32>
    %108 = vector.multi_reduction <add>, %107, %cst_45 [1] : vector<8x128xf32> to vector<8xf32>
    %109 = vector.shape_cast %108 : vector<8xf32> to vector<8x1xf32>
    %110 = math.log %109 : vector<8x1xf32>
    %111 = vector.broadcast %110 : vector<8x1xf32> to vector<8x128xf32>
    %112 = arith.subf %106, %111 : vector<8x128xf32>
    %113 = arith.index_cast %c3_i32 : i32 to index
    %c0_46 = arith.constant 0 : index
    %c0_47 = arith.constant 0 : index
    %114 = vector.load %arg9[%113, %c0_46, %c0_47] : memref<8x8x128xf32, #tpu.memory_space<vmem>>, vector<1x8x128xf32>
    %115 = vector.shape_cast %114 : vector<1x8x128xf32> to vector<8x128xf32>
    %116 = vector.shape_cast %112 : vector<8x128xf32> to vector<1x8x128xf32>
    tpu.vector_store %arg9[%113, %c0_46, %c0_47], %116 {strides = array<i32>} : memref<8x8x128xf32, #tpu.memory_space<vmem>>, vector<1x8x128xf32>,
    %c4_i32 = arith.constant 4 : i32
    %117 = arith.index_cast %c4_i32 : i32 to index
    %c0_48 = arith.constant 0 : index
    %c0_49 = arith.constant 0 : index
    %118 = vector.load %arg3[%117, %c0_48, %c0_49] : memref<8x8x128xbf16, #tpu.memory_space<vmem>>, vector<1x8x128xbf16>
    %119 = vector.shape_cast %118 : vector<1x8x128xbf16> to vector<8x128xbf16>
    %cst_50 = arith.constant dense<0.000000e+00> : vector<8x128xf32>
    %120 = tpu.matmul %119, %3, %cst_50 {dimension_numbers = #tpu.dot_dimension_numbers<[1], [0], [0], [1], [0, 0, 1, 1], [], []>} : vector<8x128xbf16>, vector<128x128xbf16>, vector<8x128xf32> -> vector<8x128xf32>
    %121 = arith.truncf %99 : vector<8x128xf32> to vector<8x128xbf16>
    %cst_51 = arith.constant dense<0.000000e+00> : vector<8x128xf32>
    %122 = tpu.matmul %121, %4, %cst_51 {dimension_numbers = #tpu.dot_dimension_numbers<[1], [0], [0], [1], [0, 0, 1, 1], [], []>} : vector<8x128xbf16>, vector<128x128xbf16>, vector<8x128xf32> -> vector<8x128xf32>
    %123 = arith.addf %120, %122 : vector<8x128xf32>
    %124 = arith.addf %123, %8 : vector<8x128xf32>
    %125 = math.tanh %124 : vector<8x128xf32>
    %126 = arith.truncf %125 : vector<8x128xf32> to vector<8x128xbf16>
    %cst_52 = arith.constant dense<0.000000e+00> : vector<8x128xf32>
    %127 = tpu.matmul %126, %5, %cst_52 {dimension_numbers = #tpu.dot_dimension_numbers<[1], [0], [0], [1], [0, 0, 1, 1], [], []>} : vector<8x128xbf16>, vector<128x128xbf16>, vector<8x128xf32> -> vector<8x128xf32>
    %128 = arith.addf %127, %11 : vector<8x128xf32>
    %cst_53 = arith.constant dense<0xFF800000> : vector<8xf32>
    %129 = vector.multi_reduction <maximumf>, %128, %cst_53 [1] : vector<8x128xf32> to vector<8xf32>
    %130 = vector.shape_cast %129 : vector<8xf32> to vector<8x1xf32>
    %131 = vector.broadcast %130 : vector<8x1xf32> to vector<8x128xf32>
    %132 = arith.subf %128, %131 : vector<8x128xf32>
    %133 = math.exp %132 : vector<8x128xf32>
    %cst_54 = arith.constant dense<0.000000e+00> : vector<8xf32>
    %134 = vector.multi_reduction <add>, %133, %cst_54 [1] : vector<8x128xf32> to vector<8xf32>
    %135 = vector.shape_cast %134 : vector<8xf32> to vector<8x1xf32>
    %136 = math.log %135 : vector<8x1xf32>
    %137 = vector.broadcast %136 : vector<8x1xf32> to vector<8x128xf32>
    %138 = arith.subf %132, %137 : vector<8x128xf32>
    %139 = arith.index_cast %c4_i32 : i32 to index
    %c0_55 = arith.constant 0 : index
    %c0_56 = arith.constant 0 : index
    %140 = vector.load %arg9[%139, %c0_55, %c0_56] : memref<8x8x128xf32, #tpu.memory_space<vmem>>, vector<1x8x128xf32>
    %141 = vector.shape_cast %140 : vector<1x8x128xf32> to vector<8x128xf32>
    %142 = vector.shape_cast %138 : vector<8x128xf32> to vector<1x8x128xf32>
    tpu.vector_store %arg9[%139, %c0_55, %c0_56], %142 {strides = array<i32>} : memref<8x8x128xf32, #tpu.memory_space<vmem>>, vector<1x8x128xf32>,
    %c5_i32 = arith.constant 5 : i32
    %143 = arith.index_cast %c5_i32 : i32 to index
    %c0_57 = arith.constant 0 : index
    %c0_58 = arith.constant 0 : index
    %144 = vector.load %arg3[%143, %c0_57, %c0_58] : memref<8x8x128xbf16, #tpu.memory_space<vmem>>, vector<1x8x128xbf16>
    %145 = vector.shape_cast %144 : vector<1x8x128xbf16> to vector<8x128xbf16>
    %cst_59 = arith.constant dense<0.000000e+00> : vector<8x128xf32>
    %146 = tpu.matmul %145, %3, %cst_59 {dimension_numbers = #tpu.dot_dimension_numbers<[1], [0], [0], [1], [0, 0, 1, 1], [], []>} : vector<8x128xbf16>, vector<128x128xbf16>, vector<8x128xf32> -> vector<8x128xf32>
    %147 = arith.truncf %125 : vector<8x128xf32> to vector<8x128xbf16>
    %cst_60 = arith.constant dense<0.000000e+00> : vector<8x128xf32>
    %148 = tpu.matmul %147, %4, %cst_60 {dimension_numbers = #tpu.dot_dimension_numbers<[1], [0], [0], [1], [0, 0, 1, 1], [], []>} : vector<8x128xbf16>, vector<128x128xbf16>, vector<8x128xf32> -> vector<8x128xf32>
    %149 = arith.addf %146, %148 : vector<8x128xf32>
    %150 = arith.addf %149, %8 : vector<8x128xf32>
    %151 = math.tanh %150 : vector<8x128xf32>
    %152 = arith.truncf %151 : vector<8x128xf32> to vector<8x128xbf16>
    %cst_61 = arith.constant dense<0.000000e+00> : vector<8x128xf32>
    %153 = tpu.matmul %152, %5, %cst_61 {dimension_numbers = #tpu.dot_dimension_numbers<[1], [0], [0], [1], [0, 0, 1, 1], [], []>} : vector<8x128xbf16>, vector<128x128xbf16>, vector<8x128xf32> -> vector<8x128xf32>
    %154 = arith.addf %153, %11 : vector<8x128xf32>
    %cst_62 = arith.constant dense<0xFF800000> : vector<8xf32>
    %155 = vector.multi_reduction <maximumf>, %154, %cst_62 [1] : vector<8x128xf32> to vector<8xf32>
    %156 = vector.shape_cast %155 : vector<8xf32> to vector<8x1xf32>
    %157 = vector.broadcast %156 : vector<8x1xf32> to vector<8x128xf32>
    %158 = arith.subf %154, %157 : vector<8x128xf32>
    %159 = math.exp %158 : vector<8x128xf32>
    %cst_63 = arith.constant dense<0.000000e+00> : vector<8xf32>
    %160 = vector.multi_reduction <add>, %159, %cst_63 [1] : vector<8x128xf32> to vector<8xf32>
    %161 = vector.shape_cast %160 : vector<8xf32> to vector<8x1xf32>
    %162 = math.log %161 : vector<8x1xf32>
    %163 = vector.broadcast %162 : vector<8x1xf32> to vector<8x128xf32>
    %164 = arith.subf %158, %163 : vector<8x128xf32>
    %165 = arith.index_cast %c5_i32 : i32 to index
    %c0_64 = arith.constant 0 : index
    %c0_65 = arith.constant 0 : index
    %166 = vector.load %arg9[%165, %c0_64, %c0_65] : memref<8x8x128xf32, #tpu.memory_space<vmem>>, vector<1x8x128xf32>
    %167 = vector.shape_cast %166 : vector<1x8x128xf32> to vector<8x128xf32>
    %168 = vector.shape_cast %164 : vector<8x128xf32> to vector<1x8x128xf32>
    tpu.vector_store %arg9[%165, %c0_64, %c0_65], %168 {strides = array<i32>} : memref<8x8x128xf32, #tpu.memory_space<vmem>>, vector<1x8x128xf32>,
    %c6_i32 = arith.constant 6 : i32
    %169 = arith.index_cast %c6_i32 : i32 to index
    %c0_66 = arith.constant 0 : index
    %c0_67 = arith.constant 0 : index
    %170 = vector.load %arg3[%169, %c0_66, %c0_67] : memref<8x8x128xbf16, #tpu.memory_space<vmem>>, vector<1x8x128xbf16>
    %171 = vector.shape_cast %170 : vector<1x8x128xbf16> to vector<8x128xbf16>
    %cst_68 = arith.constant dense<0.000000e+00> : vector<8x128xf32>
    %172 = tpu.matmul %171, %3, %cst_68 {dimension_numbers = #tpu.dot_dimension_numbers<[1], [0], [0], [1], [0, 0, 1, 1], [], []>} : vector<8x128xbf16>, vector<128x128xbf16>, vector<8x128xf32> -> vector<8x128xf32>
    %173 = arith.truncf %151 : vector<8x128xf32> to vector<8x128xbf16>
    %cst_69 = arith.constant dense<0.000000e+00> : vector<8x128xf32>
    %174 = tpu.matmul %173, %4, %cst_69 {dimension_numbers = #tpu.dot_dimension_numbers<[1], [0], [0], [1], [0, 0, 1, 1], [], []>} : vector<8x128xbf16>, vector<128x128xbf16>, vector<8x128xf32> -> vector<8x128xf32>
    %175 = arith.addf %172, %174 : vector<8x128xf32>
    %176 = arith.addf %175, %8 : vector<8x128xf32>
    %177 = math.tanh %176 : vector<8x128xf32>
    %178 = arith.truncf %177 : vector<8x128xf32> to vector<8x128xbf16>
    %cst_70 = arith.constant dense<0.000000e+00> : vector<8x128xf32>
    %179 = tpu.matmul %178, %5, %cst_70 {dimension_numbers = #tpu.dot_dimension_numbers<[1], [0], [0], [1], [0, 0, 1, 1], [], []>} : vector<8x128xbf16>, vector<128x128xbf16>, vector<8x128xf32> -> vector<8x128xf32>
    %180 = arith.addf %179, %11 : vector<8x128xf32>
    %cst_71 = arith.constant dense<0xFF800000> : vector<8xf32>
    %181 = vector.multi_reduction <maximumf>, %180, %cst_71 [1] : vector<8x128xf32> to vector<8xf32>
    %182 = vector.shape_cast %181 : vector<8xf32> to vector<8x1xf32>
    %183 = vector.broadcast %182 : vector<8x1xf32> to vector<8x128xf32>
    %184 = arith.subf %180, %183 : vector<8x128xf32>
    %185 = math.exp %184 : vector<8x128xf32>
    %cst_72 = arith.constant dense<0.000000e+00> : vector<8xf32>
    %186 = vector.multi_reduction <add>, %185, %cst_72 [1] : vector<8x128xf32> to vector<8xf32>
    %187 = vector.shape_cast %186 : vector<8xf32> to vector<8x1xf32>
    %188 = math.log %187 : vector<8x1xf32>
    %189 = vector.broadcast %188 : vector<8x1xf32> to vector<8x128xf32>
    %190 = arith.subf %184, %189 : vector<8x128xf32>
    %191 = arith.index_cast %c6_i32 : i32 to index
    %c0_73 = arith.constant 0 : index
    %c0_74 = arith.constant 0 : index
    %192 = vector.load %arg9[%191, %c0_73, %c0_74] : memref<8x8x128xf32, #tpu.memory_space<vmem>>, vector<1x8x128xf32>
    %193 = vector.shape_cast %192 : vector<1x8x128xf32> to vector<8x128xf32>
    %194 = vector.shape_cast %190 : vector<8x128xf32> to vector<1x8x128xf32>
    tpu.vector_store %arg9[%191, %c0_73, %c0_74], %194 {strides = array<i32>} : memref<8x8x128xf32, #tpu.memory_space<vmem>>, vector<1x8x128xf32>,
    %c7_i32 = arith.constant 7 : i32
    %195 = arith.index_cast %c7_i32 : i32 to index
    %c0_75 = arith.constant 0 : index
    %c0_76 = arith.constant 0 : index
    %196 = vector.load %arg3[%195, %c0_75, %c0_76] : memref<8x8x128xbf16, #tpu.memory_space<vmem>>, vector<1x8x128xbf16>
    %197 = vector.shape_cast %196 : vector<1x8x128xbf16> to vector<8x128xbf16>
    %cst_77 = arith.constant dense<0.000000e+00> : vector<8x128xf32>
    %198 = tpu.matmul %197, %3, %cst_77 {dimension_numbers = #tpu.dot_dimension_numbers<[1], [0], [0], [1], [0, 0, 1, 1], [], []>} : vector<8x128xbf16>, vector<128x128xbf16>, vector<8x128xf32> -> vector<8x128xf32>
    %199 = arith.truncf %177 : vector<8x128xf32> to vector<8x128xbf16>
    %cst_78 = arith.constant dense<0.000000e+00> : vector<8x128xf32>
    %200 = tpu.matmul %199, %4, %cst_78 {dimension_numbers = #tpu.dot_dimension_numbers<[1], [0], [0], [1], [0, 0, 1, 1], [], []>} : vector<8x128xbf16>, vector<128x128xbf16>, vector<8x128xf32> -> vector<8x128xf32>
    %201 = arith.addf %198, %200 : vector<8x128xf32>
    %202 = arith.addf %201, %8 : vector<8x128xf32>
    %203 = math.tanh %202 : vector<8x128xf32>
    %204 = arith.truncf %203 : vector<8x128xf32> to vector<8x128xbf16>
    %cst_79 = arith.constant dense<0.000000e+00> : vector<8x128xf32>
    %205 = tpu.matmul %204, %5, %cst_79 {dimension_numbers = #tpu.dot_dimension_numbers<[1], [0], [0], [1], [0, 0, 1, 1], [], []>} : vector<8x128xbf16>, vector<128x128xbf16>, vector<8x128xf32> -> vector<8x128xf32>
    %206 = arith.addf %205, %11 : vector<8x128xf32>
    %cst_80 = arith.constant dense<0xFF800000> : vector<8xf32>
    %207 = vector.multi_reduction <maximumf>, %206, %cst_80 [1] : vector<8x128xf32> to vector<8xf32>
    %208 = vector.shape_cast %207 : vector<8xf32> to vector<8x1xf32>
    %209 = vector.broadcast %208 : vector<8x1xf32> to vector<8x128xf32>
    %210 = arith.subf %206, %209 : vector<8x128xf32>
    %211 = math.exp %210 : vector<8x128xf32>
    %cst_81 = arith.constant dense<0.000000e+00> : vector<8xf32>
    %212 = vector.multi_reduction <add>, %211, %cst_81 [1] : vector<8x128xf32> to vector<8xf32>
    %213 = vector.shape_cast %212 : vector<8xf32> to vector<8x1xf32>
    %214 = math.log %213 : vector<8x1xf32>
    %215 = vector.broadcast %214 : vector<8x1xf32> to vector<8x128xf32>
    %216 = arith.subf %210, %215 : vector<8x128xf32>
    %217 = arith.index_cast %c7_i32 : i32 to index
    %c0_82 = arith.constant 0 : index
    %c0_83 = arith.constant 0 : index
    %218 = vector.load %arg9[%217, %c0_82, %c0_83] : memref<8x8x128xf32, #tpu.memory_space<vmem>>, vector<1x8x128xf32>
    %219 = vector.shape_cast %218 : vector<1x8x128xf32> to vector<8x128xf32>
    %220 = vector.shape_cast %216 : vector<8x128xf32> to vector<1x8x128xf32>
    tpu.vector_store %arg9[%217, %c0_82, %c0_83], %220 {strides = array<i32>} : memref<8x8x128xf32, #tpu.memory_space<vmem>>, vector<1x8x128xf32>,
    %c8_i32 = arith.constant 8 : i32
    %c0_84 = arith.constant 0 : index
    %c0_85 = arith.constant 0 : index
    %221 = vector.load %arg10[%c0_84, %c0_85] : memref<8x128xf32, #tpu.memory_space<vmem>>, vector<8x128xf32>
    tpu.vector_store %arg10[%c0_84, %c0_85], %203 {strides = array<i32>} : memref<8x128xf32, #tpu.memory_space<vmem>>, vector<8x128xf32>,
    return
  }
  func.func @transform_0(%arg0: i32, %arg1: i32) -> (i32, i32) {
    %c0_i32 = arith.constant 0 : i32
    %c0_i32_0 = arith.constant 0 : i32
    return %arg0, %c0_i32 : i32, i32
  }
  func.func @transform_1(%arg0: i32, %arg1: i32) -> (i32, i32, i32) {
    %c0_i32 = arith.constant 0 : i32
    %c0_i32_0 = arith.constant 0 : i32
    return %arg1, %arg0, %c0_i32 : i32, i32, i32
  }
  func.func @transform_2(%arg0: i32, %arg1: i32) -> (i32, i32) {
    %c0_i32 = arith.constant 0 : i32
    %c0_i32_0 = arith.constant 0 : i32
    %c0_i32_1 = arith.constant 0 : i32
    return %c0_i32, %c0_i32_0 : i32, i32
  }
  func.func @transform_3(%arg0: i32, %arg1: i32) -> (i32, i32) {
    %c0_i32 = arith.constant 0 : i32
    %c0_i32_0 = arith.constant 0 : i32
    %c0_i32_1 = arith.constant 0 : i32
    return %c0_i32, %c0_i32_0 : i32, i32
  }
  func.func @transform_4(%arg0: i32, %arg1: i32) -> (i32, i32) {
    %c0_i32 = arith.constant 0 : i32
    %c0_i32_0 = arith.constant 0 : i32
    %c0_i32_1 = arith.constant 0 : i32
    return %c0_i32, %c0_i32_0 : i32, i32
  }
  func.func @transform_5(%arg0: i32, %arg1: i32) -> (i32, i32) {
    %c0_i32 = arith.constant 0 : i32
    %c0_i32_0 = arith.constant 0 : i32
    %c0_i32_1 = arith.constant 0 : i32
    return %c0_i32, %c0_i32_0 : i32, i32
  }
  func.func @transform_6(%arg0: i32, %arg1: i32) -> (i32, i32) {
    %c0_i32 = arith.constant 0 : i32
    %c0_i32_0 = arith.constant 0 : i32
    %c0_i32_1 = arith.constant 0 : i32
    return %c0_i32, %c0_i32_0 : i32, i32
  }
  func.func @transform_7(%arg0: i32, %arg1: i32) -> (i32, i32, i32) {
    %c0_i32 = arith.constant 0 : i32
    %c0_i32_0 = arith.constant 0 : i32
    return %arg1, %arg0, %c0_i32 : i32, i32, i32
  }
  func.func @transform_8(%arg0: i32, %arg1: i32) -> (i32, i32) {
    %c0_i32 = arith.constant 0 : i32
    %c0_i32_0 = arith.constant 0 : i32
    return %arg0, %c0_i32 : i32, i32
  }
}

</mosaic_0001>

<bundles_post_ra>
// kernel: rnn_forward_sequence.1
= control target key start
LH: loop header
LB: loop body
LE: loop exit
PB: predicated region body
PF: predicated region fallthrough
CT: control target
= control target key end

     0   :  { %v2205_v1 = vmov 0.0   ;;  %vm2206_vm0 = vmmov 0   ;;  %s2943_s0 = inlined_call_operand.vmem [shape: f32[8,128], index: 0, kind: input, shape index: {}, may-alias: {0,8}]   ;;  %s2944_s1 = inlined_call_operand.vmem [shape: bf16[8,8,128], index: 1, kind: input, shape index: {}]   ;;  %s2945_s2 = inlined_call_operand.vmem [shape: bf16[128,128], index: 2, kind: input, shape index: {}]   ;;  %s2946_s3 = inlined_call_operand.vmem [shape: bf16[128,128], index: 3, kind: input, shape index: {}]   ;;  %s2947_s4 = inlined_call_operand.vmem [shape: f32[1,128], index: 4, kind: input, shape index: {}]   ;;  %s2948_s5 = inlined_call_operand.vmem [shape: bf16[128,128], index: 5, kind: input, shape index: {}]   ;;  %s2949_s6 = inlined_call_operand.vmem [shape: f32[1,128], index: 6, kind: input, shape index: {}]   ;;  %s2950_s7 = inlined_call_operand.hbm [shape: f32[8,8,128], index: 7, kind: output, shape index: {0}]   ;;  %s2951_s8 = inlined_call_operand.vmem [shape: f32[8,128], index: 8, kind: output, shape index: {1}, may-alias: {0,8}]  }
   0x1   :  { %v2258_v0 = vld [vmem:[%s2946_s3] sm:$0xff]   ;;  %1608 = vmatprep.subr.bf16.mxu0 %v2205_v1  ;;  %1628 = vmatprep.subr.bf16.mxu1 %v2205_v1  ;;  %v2271_v3 = vld [vmem:[%s2946_s3 + $0x8] sm:$0xff]   ;;  %v2289_v5 = vld [vmem:[%s2946_s3 + $0x10] sm:$0xff]  }
   0x2   :  { %v2265_v2 = vld [vmem:[%s2945_s2] sm:$0xff]   ;;  %1609 = vmatpush3.bf16.msra.mxu0 %v2258_v0  ;;  %1624 = vmatprep.mubr.msk.bf16.mxu0 %vm2206_vm0, %v2205_v1  ;;  %v2280_v4 = vld [vmem:[%s2945_s2 + $0x8] sm:$0xff]   ;;  %v2296_v6 = vld [vmem:[%s2945_s2 + $0x10] sm:$0xff]  }
   0x3   :  { %1629 = vmatpush3.bf16.msra.mxu1 %v2265_v2  ;;  %1610 = vmatprep.subr.bf16.mxu0 %v2205_v1  ;;  %v2303_v7 = vld [vmem:[%s2946_s3 + $0x18] sm:$0xff]   ;;  %v2317_v9 = vld [vmem:[%s2946_s3 + $0x20] sm:$0xff]   ;;  %v2331_v11 = vld [vmem:[%s2946_s3 + $0x28] sm:$0xff]  }
   0x4   :  { %1630 = vmatprep.subr.bf16.mxu1 %v2205_v1  ;;  %1644 = vmatprep.mubr.msk.bf16.mxu1 %vm2206_vm0, %v2205_v1  ;;  %v2310_v8 = vld [vmem:[%s2945_s2 + $0x18] sm:$0xff]   ;;  %v2324_v10 = vld [vmem:[%s2945_s2 + $0x20] sm:$0xff]   ;;  %v2338_v12 = vld [vmem:[%s2945_s2 + $0x28] sm:$0xff]  }
   0x5   :  { %v2344_v13 = vld [vmem:[%s2946_s3 + $0x30] sm:$0xff]  }
   0x6   :  { %1611 = vmatpush3.bf16.msra.mxu0 %v2271_v3  ;;  %v2352_v14 = vld [vmem:[%s2945_s2 + $0x30] sm:$0xff]  }
   0x7   :  { %1631 = vmatpush3.bf16.msra.mxu1 %v2280_v4  ;;  %1612 = vmatprep.subr.bf16.mxu0 %v2205_v1 }
   0x8   :  { %1632 = vmatprep.subr.bf16.mxu1 %v2205_v1 }
   0xa   :  { %1613 = vmatpush3.bf16.msra.mxu0 %v2289_v5 }
   0xb   :  { %1633 = vmatpush3.bf16.msra.mxu1 %v2296_v6  ;;  %1614 = vmatprep.subr.bf16.mxu0 %v2205_v1 }
   0xc   :  { %1634 = vmatprep.subr.bf16.mxu1 %v2205_v1 }
   0xe   :  { %1615 = vmatpush3.bf16.msra.mxu0 %v2303_v7 }
   0xf   :  { %1635 = vmatpush3.bf16.msra.mxu1 %v2310_v8  ;;  %1616 = vmatprep.subr.bf16.mxu0 %v2205_v1 }
  0x10   :  { %1636 = vmatprep.subr.bf16.mxu1 %v2205_v1 }
  0x12   :  { %1617 = vmatpush3.bf16.msra.mxu0 %v2317_v9 }
  0x13   :  { %1637 = vmatpush3.bf16.msra.mxu1 %v2324_v10  ;;  %1618 = vmatprep.subr.bf16.mxu0 %v2205_v1 }
  0x14   :  { %1638 = vmatprep.subr.bf16.mxu1 %v2205_v1 }
  0x16   :  { %1619 = vmatpush3.bf16.msra.mxu0 %v2331_v11 }
  0x17   :  { %1639 = vmatpush3.bf16.msra.mxu1 %v2338_v12  ;;  %1620 = vmatprep.subr.bf16.mxu0 %v2205_v1 }
  0x18   :  { %14 = vsyncpa [#allocation3], 0  ;;  %1640 = vmatprep.subr.bf16.mxu1 %v2205_v1  ;;  %v2359_v15 = vld [vmem:[%s2946_s3 + $0x38] sm:$0xff]   ;;  %v34_v16 = vld [vmem:[%s2943_s0] sm:$0xff] }
  0x19   :  { %v2369_v17 = vld [vmem:[%s2945_s2 + $0x38] sm:$0xff]   ;;  %v100_v18 = vpack.c.bf16 %v34_v16, %v34_v16  ;;  %v2376_v19 = vld [vmem:[%s2948_s5] sm:$0xff]   ;;  %v2388_v21 = vld [vmem:[%s2948_s5 + $0x8] sm:$0xff]  }
  0x1a   :  { %1621 = vmatpush3.bf16.msra.mxu0 %v2344_v13  ;;  %v99_v20 = vld [vmem:[%s2944_s1] sm:$0xf]  ;;  %v2401_v22 = vld [vmem:[%s2948_s5 + $0x10] sm:$0xff]   ;;  %v2410_v23 = vld [vmem:[%s2948_s5 + $0x18] sm:$0xff]  }
  0x1b   :  { %1641 = vmatpush3.bf16.msra.mxu1 %v2352_v14  ;;  %1622 = vmatprep.subr.bf16.mxu0 %v2205_v1  ;;  %v2430_v24 = vld [vmem:[%s2948_s5 + $0x20] sm:$0xff]   ;;  %v2437_v25 = vld [vmem:[%s2948_s5 + $0x28] sm:$0xff]   ;;  %v2444_v26 = vld [vmem:[%s2948_s5 + $0x30] sm:$0xff]  }
  0x1c   :  { %1642 = vmatprep.subr.bf16.mxu1 %v2205_v1  ;;  %v2451_v27 = vld [vmem:[%s2948_s5 + $0x38] sm:$0xff]   ;;  %v2458_v29 = vld [vmem:[%s2947_s4] ss:$0 sm:$0xff]  ;;  %v1385_v41 = vld [vmem:[%s2944_s1 + $0x4] sm:$0xf] }
  0x1d   :  { %v2521_v42 = vld [vmem:[%s2949_s6] ss:$0 sm:$0xff]  ;;  %v1386_v60 = vld [vmem:[%s2944_s1 + $0x8] sm:$0xf] }
  0x1e   :  { %1623 = vmatpush3.bf16.msra.mxu0 %v2359_v15 }
  0x1f   :  { %1643 = vmatpush3.bf16.msra.mxu1 %v2369_v17  ;;  %1648 = vmatprep.subr.bf16.mxu0 %v2205_v1 }
  0x20   :  { %1668 = vmatprep.subr.bf16.mxu1 %v2205_v1 }
  0x21   :  { %1625 = vmatmul.mubr.bf16.vlgmr.msra.gmra.mrb[0].mxu0 %v100_v18 }
  0x22   :  { %1645 = vmatmul.mubr.bf16.vlgmr.msra.gmra.mrb[0].mxu1 %v99_v20  ;;  %1649 = vmatpush3.bf16.msra.mxu0 %v2376_v19 }
  0x23   :  { %1669 = vmatpush3.bf16.msra.mxu1 %v2258_v0  ;;  %1650 = vmatprep.subr.bf16.mxu0 %v2205_v1 }
  0x24   :  { %1670 = vmatprep.subr.bf16.mxu1 %v2205_v1  ;;  %1664 = vmatprep.mubr.msk.bf16.mxu0 %vm2206_vm0, %v2205_v1 }
  0x25   :  { %1684 = vmatprep.mubr.msk.bf16.mxu1 %vm2206_vm0, %v2205_v1 }
  0x26   :  { %1651 = vmatpush3.bf16.msra.mxu0 %v2388_v21 }
  0x27   :  { %1671 = vmatpush3.bf16.msra.mxu1 %v2271_v3  ;;  %1652 = vmatprep.subr.bf16.mxu0 %v2205_v1 }
  0x28   :  { %1672 = vmatprep.subr.bf16.mxu1 %v2205_v1 }
  0x2a   :  { %1653 = vmatpush3.bf16.msra.mxu0 %v2401_v22 }
  0x2b   :  { %1673 = vmatpush3.bf16.msra.mxu1 %v2289_v5  ;;  %1654 = vmatprep.subr.bf16.mxu0 %v2205_v1 }
  0x2c   :  { %1674 = vmatprep.subr.bf16.mxu1 %v2205_v1 }
  0x2e   :  { %1655 = vmatpush3.bf16.msra.mxu0 %v2410_v23 }
  0x2f   :  { %1675 = vmatpush3.bf16.msra.mxu1 %v2303_v7  ;;  %1656 = vmatprep.subr.bf16.mxu0 %v2205_v1 }
  0x30   :  { %1676 = vmatprep.subr.bf16.mxu1 %v2205_v1 }
  0x32   :  { %1657 = vmatpush3.bf16.msra.mxu0 %v2430_v24 }
  0x33   :  { %1677 = vmatpush3.bf16.msra.mxu1 %v2317_v9  ;;  %1658 = vmatprep.subr.bf16.mxu0 %v2205_v1 }
  0x34   :  { %1678 = vmatprep.subr.bf16.mxu1 %v2205_v1 }
  0x36   :  { %1659 = vmatpush3.bf16.msra.mxu0 %v2437_v25 }
  0x37   :  { %1679 = vmatpush3.bf16.msra.mxu1 %v2331_v11  ;;  %1660 = vmatprep.subr.bf16.mxu0 %v2205_v1 }
  0x38   :  { %1680 = vmatprep.subr.bf16.mxu1 %v2205_v1 }
  0x3a   :  { %1661 = vmatpush3.bf16.msra.mxu0 %v2444_v26 }
  0x3b   :  { %1681 = vmatpush3.bf16.msra.mxu1 %v2344_v13  ;;  %1662 = vmatprep.subr.bf16.mxu0 %v2205_v1 }
  0x3c   :  { %1682 = vmatprep.subr.bf16.mxu1 %v2205_v1 }
  0x3e   :  { %1663 = vmatpush3.bf16.msra.mxu0 %v2451_v27 }
  0x3f   :  { %1683 = vmatpush3.bf16.msra.mxu1 %v2359_v15  ;;  %1688 = vmatprep.subr.bf16.mxu0 %v2205_v1 }
  0x40   :  { %1708 = vmatprep.subr.bf16.mxu1 %v2205_v1 }
  0xf4   :  { %v183_v28 = vpop.f32.mrb[0].mxu0 }
  0xf5   :  { %v271_v30 = vpop.f32.mrb[0].mxu1  ;;  %v1626_v31 = vpop.f32.mrb[1].mxu0 }
  0xf6   :  { %v272_v32 = vadd.f32 %v271_v30, %v183_v28  ;;  %v1646_v33 = vpop.f32.mrb[1].mxu1  ;;  %v186_v34 = vpop.f32.mrb[2].mxu0 }
  0xf7   :  { %v274_v35 = vpop.f32.mrb[2].mxu1  ;;  %v1627_v36 = vpop.f32.mrb[3].mxu0 }
  0xf8   :  { %v277_v37 = vadd.f32 %v2458_v29, %v272_v32  ;;  %v1647_v38 = vpop.f32.mrb[3].mxu1 }
  0xfa   :  { %2117 = vtanh.f32 %v277_v37 }
 0x104   :  { %v2118_v39 = vpop.eup %2117 }
 0x105   :  { %v279_v40 = vpack.c.bf16 %v2118_v39, %v2118_v39 }
 0x107   :  { %1665 = vmatmul.mubr.bf16.vlgmr.msra.gmra.mrb[4].mxu0 %v279_v40  ;;  %1685 = vmatmul.mubr.bf16.vlgmr.msra.gmra.mrb[4].mxu1 %v279_v40  ;;  %v1387_v40 = vld [vmem:[%s2944_s1 + $0xc] sm:$0xf] }
 0x108   :  { %1689 = vmatpush3.bf16.msra.mxu0 %v2265_v2  ;;  %1704 = vmatprep.mubr.msk.bf16.mxu0 %vm2206_vm0, %v2205_v1 }
 0x109   :  { %1690 = vmatprep.subr.bf16.mxu0 %v2205_v1  ;;  %1709 = vmatpush3.bf16.msra.mxu1 %v2376_v19 }
 0x10a   :  { %1710 = vmatprep.subr.bf16.mxu1 %v2205_v1  ;;  %1724 = vmatprep.mubr.msk.bf16.mxu1 %vm2206_vm0, %v2205_v1 }
 0x10c   :  { %1691 = vmatpush3.bf16.msra.mxu0 %v2280_v4 }
 0x10d   :  { %1692 = vmatprep.subr.bf16.mxu0 %v2205_v1  ;;  %1711 = vmatpush3.bf16.msra.mxu1 %v2388_v21 }
 0x10e   :  { %1712 = vmatprep.subr.bf16.mxu1 %v2205_v1 }
 0x110   :  { %1693 = vmatpush3.bf16.msra.mxu0 %v2296_v6 }
 0x111   :  { %1694 = vmatprep.subr.bf16.mxu0 %v2205_v1  ;;  %1713 = vmatpush3.bf16.msra.mxu1 %v2401_v22 }
 0x112   :  { %1714 = vmatprep.subr.bf16.mxu1 %v2205_v1 }
 0x114   :  { %1695 = vmatpush3.bf16.msra.mxu0 %v2310_v8 }
 0x115   :  { %1696 = vmatprep.subr.bf16.mxu0 %v2205_v1  ;;  %1715 = vmatpush3.bf16.msra.mxu1 %v2410_v23 }
 0x116   :  { %1716 = vmatprep.subr.bf16.mxu1 %v2205_v1 }
 0x118   :  { %1697 = vmatpush3.bf16.msra.mxu0 %v2324_v10 }
 0x119   :  { %1698 = vmatprep.subr.bf16.mxu0 %v2205_v1  ;;  %1717 = vmatpush3.bf16.msra.mxu1 %v2430_v24 }
 0x11a   :  { %1718 = vmatprep.subr.bf16.mxu1 %v2205_v1 }
 0x11c   :  { %1699 = vmatpush3.bf16.msra.mxu0 %v2338_v12 }
 0x11d   :  { %1700 = vmatprep.subr.bf16.mxu0 %v2205_v1  ;;  %1719 = vmatpush3.bf16.msra.mxu1 %v2437_v25 }
 0x11e   :  { %1720 = vmatprep.subr.bf16.mxu1 %v2205_v1 }
 0x120   :  { %1701 = vmatpush3.bf16.msra.mxu0 %v2352_v14 }
 0x121   :  { %1702 = vmatprep.subr.bf16.mxu0 %v2205_v1  ;;  %1721 = vmatpush3.bf16.msra.mxu1 %v2444_v26 }
 0x122   :  { %1722 = vmatprep.subr.bf16.mxu1 %v2205_v1 }
 0x124   :  { %1703 = vmatpush3.bf16.msra.mxu0 %v2369_v17 }
 0x125   :  { %1728 = vmatprep.subr.bf16.mxu0 %v2205_v1  ;;  %1723 = vmatpush3.bf16.msra.mxu1 %v2451_v27 }
 0x126   :  { %1748 = vmatprep.subr.bf16.mxu1 %v2205_v1 }
 0x127   :  { %1705 = vmatmul.mubr.bf16.vlgmr.msra.gmra.mrb[8].mxu0 %v1385_v41 }
 0x128   :  { %1729 = vmatpush3.bf16.msra.mxu0 %v2258_v0  ;;  %1744 = vmatprep.mubr.msk.bf16.mxu0 %vm2206_vm0, %v2205_v1 }
 0x129   :  { %1730 = vmatprep.subr.bf16.mxu0 %v2205_v1 }
 0x12c   :  { %1731 = vmatpush3.bf16.msra.mxu0 %v2271_v3 }
 0x12d   :  { %1732 = vmatprep.subr.bf16.mxu0 %v2205_v1 }
 0x130   :  { %1733 = vmatpush3.bf16.msra.mxu0 %v2289_v5 }
 0x131   :  { %1734 = vmatprep.subr.bf16.mxu0 %v2205_v1 }
 0x134   :  { %1735 = vmatpush3.bf16.msra.mxu0 %v2303_v7 }
 0x135   :  { %1736 = vmatprep.subr.bf16.mxu0 %v2205_v1 }
 0x138   :  { %1737 = vmatpush3.bf16.msra.mxu0 %v2317_v9 }
 0x139   :  { %1738 = vmatprep.subr.bf16.mxu0 %v2205_v1 }
 0x13c   :  { %1739 = vmatpush3.bf16.msra.mxu0 %v2331_v11 }
 0x13d   :  { %1740 = vmatprep.subr.bf16.mxu0 %v2205_v1 }
 0x140   :  { %1741 = vmatpush3.bf16.msra.mxu0 %v2344_v13 }
 0x141   :  { %1742 = vmatprep.subr.bf16.mxu0 %v2205_v1 }
 0x144   :  { %1743 = vmatpush3.bf16.msra.mxu0 %v2359_v15 }
 0x145   :  { %1768 = vmatprep.subr.bf16.mxu0 %v2205_v1 }
 0x1da   :  { %v362_v43 = vpop.f32.mrb[4].mxu0  ;;  %v415_v44 = vpop.f32.mrb[4].mxu1 }
 0x1db   :  { %v2524_v45 = vadd.f32 %v2521_v42, %v362_v43  ;;  %v1666_v46 = vpop.f32.mrb[5].mxu0  ;;  %v1686_v47 = vpop.f32.mrb[5].mxu1 }
 0x1dc   :  { %v365_v48 = vpop.f32.mrb[6].mxu0  ;;  %v418_v49 = vpop.f32.mrb[6].mxu1 }
 0x1dd   :  { %v1687_v50 = vpop.f32.mrb[7].mxu1  ;;  %368 = vmax.xlane.f32.xlu0 %v2524_v45  ;;  %v1667_v51 = vpop.f32.mrb[7].mxu0 }
 0x1fa   :  { %v455_v52 = vpop.f32.mrb[8].mxu0 }
 0x1fb   :  { %v456_v53 = vadd.f32 %v455_v52, %v415_v44  ;;  %v1706_v54 = vpop.f32.mrb[9].mxu0 }
 0x1fc   :  { %v458_v55 = vpop.f32.mrb[10].mxu0 }
 0x1fd   :  { %v461_v56 = vadd.f32 %v2458_v29, %v456_v53  ;;  %v1707_v57 = vpop.f32.mrb[11].mxu0 }
 0x1ff   :  { %2119 = vtanh.f32 %v461_v56 }
 0x209   :  { %v2120_v58 = vpop.eup %2119 }
 0x20a   :  { %v463_v59 = vpack.c.bf16 %v2120_v58, %v2120_v58 }
 0x20c   :  { %1725 = vmatmul.mubr.bf16.vlgmr.msra.gmra.mrb[8].mxu1 %v463_v59  ;;  %1745 = vmatmul.mubr.bf16.vlgmr.msra.gmra.mrb[12].mxu0 %v463_v59 }
 0x20d   :  { %1749 = vmatpush3.bf16.msra.mxu1 %v2265_v2  ;;  %1764 = vmatprep.mubr.msk.bf16.mxu1 %vm2206_vm0, %v2205_v1 }
 0x20e   :  { %1750 = vmatprep.subr.bf16.mxu1 %v2205_v1  ;;  %1769 = vmatpush3.bf16.msra.mxu0 %v2376_v19 }
 0x20f   :  { %1770 = vmatprep.subr.bf16.mxu0 %v2205_v1  ;;  %1784 = vmatprep.mubr.msk.bf16.mxu0 %vm2206_vm0, %v2205_v1 }
 0x211   :  { %1751 = vmatpush3.bf16.msra.mxu1 %v2280_v4 }
 0x212   :  { %1752 = vmatprep.subr.bf16.mxu1 %v2205_v1  ;;  %1771 = vmatpush3.bf16.msra.mxu0 %v2388_v21 }
 0x213   :  { %1772 = vmatprep.subr.bf16.mxu0 %v2205_v1 }
 0x215   :  { %1753 = vmatpush3.bf16.msra.mxu1 %v2296_v6 }
 0x216   :  { %1754 = vmatprep.subr.bf16.mxu1 %v2205_v1  ;;  %1773 = vmatpush3.bf16.msra.mxu0 %v2401_v22 }
 0x217   :  { %1774 = vmatprep.subr.bf16.mxu0 %v2205_v1 }
 0x219   :  { %1755 = vmatpush3.bf16.msra.mxu1 %v2310_v8 }
 0x21a   :  { %1756 = vmatprep.subr.bf16.mxu1 %v2205_v1  ;;  %1775 = vmatpush3.bf16.msra.mxu0 %v2410_v23 }
 0x21b   :  { %1776 = vmatprep.subr.bf16.mxu0 %v2205_v1 }
 0x21d   :  { %1757 = vmatpush3.bf16.msra.mxu1 %v2324_v10 }
 0x21e   :  { %1758 = vmatprep.subr.bf16.mxu1 %v2205_v1  ;;  %1777 = vmatpush3.bf16.msra.mxu0 %v2430_v24 }
 0x21f   :  { %1778 = vmatprep.subr.bf16.mxu0 %v2205_v1 }
 0x221   :  { %1759 = vmatpush3.bf16.msra.mxu1 %v2338_v12 }
 0x222   :  { %1760 = vmatprep.subr.bf16.mxu1 %v2205_v1  ;;  %1779 = vmatpush3.bf16.msra.mxu0 %v2437_v25 }
 0x223   :  { %1780 = vmatprep.subr.bf16.mxu0 %v2205_v1 }
 0x225   :  { %1761 = vmatpush3.bf16.msra.mxu1 %v2352_v14 }
 0x226   :  { %1762 = vmatprep.subr.bf16.mxu1 %v2205_v1  ;;  %1781 = vmatpush3.bf16.msra.mxu0 %v2444_v26 }
 0x227   :  { %1782 = vmatprep.subr.bf16.mxu0 %v2205_v1 }
 0x229   :  { %1763 = vmatpush3.bf16.msra.mxu1 %v2369_v17 }
 0x22a   :  { %1788 = vmatprep.subr.bf16.mxu1 %v2205_v1  ;;  %1783 = vmatpush3.bf16.msra.mxu0 %v2451_v27 }
 0x22b   :  { %1808 = vmatprep.subr.bf16.mxu0 %v2205_v1 }
 0x22c   :  { %1765 = vmatmul.mubr.bf16.vlgmr.msra.gmra.mrb[12].mxu1 %v1386_v60  ;;  %v1388_v60 = vld [vmem:[%s2944_s1 + $0x10] sm:$0xf] }
 0x22d   :  { %1789 = vmatpush3.bf16.msra.mxu1 %v2258_v0  ;;  %1804 = vmatprep.mubr.msk.bf16.mxu1 %vm2206_vm0, %v2205_v1 }
 0x22e   :  { %1790 = vmatprep.subr.bf16.mxu1 %v2205_v1 }
 0x231   :  { %1791 = vmatpush3.bf16.msra.mxu1 %v2271_v3 }
 0x232   :  { %1792 = vmatprep.subr.bf16.mxu1 %v2205_v1 }
 0x235   :  { %1793 = vmatpush3.bf16.msra.mxu1 %v2289_v5 }
 0x236   :  { %1794 = vmatprep.subr.bf16.mxu1 %v2205_v1 }
 0x239   :  { %1795 = vmatpush3.bf16.msra.mxu1 %v2303_v7 }
 0x23a   :  { %1796 = vmatprep.subr.bf16.mxu1 %v2205_v1 }
 0x23d   :  { %1797 = vmatpush3.bf16.msra.mxu1 %v2317_v9 }
 0x23e   :  { %1798 = vmatprep.subr.bf16.mxu1 %v2205_v1 }
 0x241   :  { %1799 = vmatpush3.bf16.msra.mxu1 %v2331_v11 }
 0x242   :  { %1800 = vmatprep.subr.bf16.mxu1 %v2205_v1 }
 0x245   :  { %1801 = vmatpush3.bf16.msra.mxu1 %v2344_v13 }
 0x246   :  { %1802 = vmatprep.subr.bf16.mxu1 %v2205_v1 }
 0x249   :  { %1803 = vmatpush3.bf16.msra.mxu1 %v2359_v15 }
 0x24a   :  { %1828 = vmatprep.subr.bf16.mxu1 %v2205_v1 }
 0x2df   :  { %v498_v61 = vpop.f32.mrb[8].mxu1  ;;  %v552_v62 = vpop.f32.mrb[12].mxu0 }
 0x2e0   :  { %v2586_v63 = vadd.f32 %v2521_v42, %v498_v61  ;;  %v1726_v16 = vpop.f32.mrb[9].mxu1  ;;  %v1746_v18 = vpop.f32.mrb[13].mxu0 }
 0x2e1   :  { %v501_v20 = vpop.f32.mrb[10].mxu1  ;;  %v555_v28 = vpop.f32.mrb[14].mxu0 }
 0x2e2   :  { %504 = vmax.xlane.f32.xlu0 %v2586_v63  ;;  %v1727_v30 = vpop.f32.mrb[11].mxu1  ;;  %v1747_v31 = vpop.f32.mrb[15].mxu0 }
 0x2ff   :  { %v592_v32 = vpop.f32.mrb[12].mxu1 }
 0x300   :  { %v593_v33 = vadd.f32 %v592_v32, %v552_v62  ;;  %v1766_v34 = vpop.f32.mrb[13].mxu1 }
 0x301   :  { %v595_v35 = vpop.f32.mrb[14].mxu1 }
 0x302   :  { %v598_v36 = vadd.f32 %v2458_v29, %v593_v33  ;;  %v1767_v37 = vpop.f32.mrb[15].mxu1 }
 0x304   :  { %2121 = vtanh.f32 %v598_v36 }
 0x30e   :  { %v2122_v38 = vpop.eup %2121 }
 0x30f   :  { %v600_v39 = vpack.c.bf16 %v2122_v38, %v2122_v38 }
 0x311   :  { %1785 = vmatmul.mubr.bf16.vlgmr.msra.gmra.mrb[16].mxu0 %v600_v39  ;;  %1805 = vmatmul.mubr.bf16.vlgmr.msra.gmra.mrb[16].mxu1 %v600_v39 }
 0x312   :  { %1809 = vmatpush3.bf16.msra.mxu0 %v2265_v2  ;;  %1824 = vmatprep.mubr.msk.bf16.mxu0 %vm2206_vm0, %v2205_v1 }
 0x313   :  { %1810 = vmatprep.subr.bf16.mxu0 %v2205_v1  ;;  %1829 = vmatpush3.bf16.msra.mxu1 %v2376_v19 }
 0x314   :  { %1830 = vmatprep.subr.bf16.mxu1 %v2205_v1  ;;  %1844 = vmatprep.mubr.msk.bf16.mxu1 %vm2206_vm0, %v2205_v1 }
 0x316   :  { %1811 = vmatpush3.bf16.msra.mxu0 %v2280_v4 }
 0x317   :  { %1812 = vmatprep.subr.bf16.mxu0 %v2205_v1  ;;  %1831 = vmatpush3.bf16.msra.mxu1 %v2388_v21 }
 0x318   :  { %1832 = vmatprep.subr.bf16.mxu1 %v2205_v1 }
 0x31a   :  { %1813 = vmatpush3.bf16.msra.mxu0 %v2296_v6 }
 0x31b   :  { %1814 = vmatprep.subr.bf16.mxu0 %v2205_v1  ;;  %1833 = vmatpush3.bf16.msra.mxu1 %v2401_v22 }
 0x31c   :  { %1834 = vmatprep.subr.bf16.mxu1 %v2205_v1 }
 0x31e   :  { %1815 = vmatpush3.bf16.msra.mxu0 %v2310_v8 }
 0x31f   :  { %1816 = vmatprep.subr.bf16.mxu0 %v2205_v1  ;;  %1835 = vmatpush3.bf16.msra.mxu1 %v2410_v23 }
 0x320   :  { %1836 = vmatprep.subr.bf16.mxu1 %v2205_v1 }
 0x322   :  { %1817 = vmatpush3.bf16.msra.mxu0 %v2324_v10 }
 0x323   :  { %1818 = vmatprep.subr.bf16.mxu0 %v2205_v1  ;;  %1837 = vmatpush3.bf16.msra.mxu1 %v2430_v24 }
 0x324   :  { %1838 = vmatprep.subr.bf16.mxu1 %v2205_v1 }
 0x326   :  { %1819 = vmatpush3.bf16.msra.mxu0 %v2338_v12 }
 0x327   :  { %1820 = vmatprep.subr.bf16.mxu0 %v2205_v1  ;;  %1839 = vmatpush3.bf16.msra.mxu1 %v2437_v25 }
 0x328   :  { %1840 = vmatprep.subr.bf16.mxu1 %v2205_v1 }
 0x32a   :  { %1821 = vmatpush3.bf16.msra.mxu0 %v2352_v14 }
 0x32b   :  { %1822 = vmatprep.subr.bf16.mxu0 %v2205_v1  ;;  %1841 = vmatpush3.bf16.msra.mxu1 %v2444_v26 }
 0x32c   :  { %1842 = vmatprep.subr.bf16.mxu1 %v2205_v1 }
 0x32e   :  { %1823 = vmatpush3.bf16.msra.mxu0 %v2369_v17 }
 0x32f   :  { %1848 = vmatprep.subr.bf16.mxu0 %v2205_v1  ;;  %1843 = vmatpush3.bf16.msra.mxu1 %v2451_v27 }
 0x330   :  { %1868 = vmatprep.subr.bf16.mxu1 %v2205_v1 }
 0x331   :  { %1825 = vmatmul.mubr.bf16.vlgmr.msra.gmra.mrb[20].mxu0 %v1387_v40 }
 0x332   :  { %1849 = vmatpush3.bf16.msra.mxu0 %v2258_v0  ;;  %1864 = vmatprep.mubr.msk.bf16.mxu0 %vm2206_vm0, %v2205_v1 }
 0x333   :  { %1850 = vmatprep.subr.bf16.mxu0 %v2205_v1 }
 0x336   :  { %1851 = vmatpush3.bf16.msra.mxu0 %v2271_v3 }
 0x337   :  { %1852 = vmatprep.subr.bf16.mxu0 %v2205_v1 }
 0x33a   :  { %1853 = vmatpush3.bf16.msra.mxu0 %v2289_v5 }
 0x33b   :  { %1854 = vmatprep.subr.bf16.mxu0 %v2205_v1 }
 0x33e   :  { %1855 = vmatpush3.bf16.msra.mxu0 %v2303_v7 }
 0x33f   :  { %1856 = vmatprep.subr.bf16.mxu0 %v2205_v1 }
 0x342   :  { %1857 = vmatpush3.bf16.msra.mxu0 %v2317_v9 }
 0x343   :  { %1858 = vmatprep.subr.bf16.mxu0 %v2205_v1 }
 0x346   :  { %1859 = vmatpush3.bf16.msra.mxu0 %v2331_v11 }
 0x347   :  { %1860 = vmatprep.subr.bf16.mxu0 %v2205_v1 }
 0x34a   :  { %1861 = vmatpush3.bf16.msra.mxu0 %v2344_v13 }
 0x34b   :  { %1862 = vmatprep.subr.bf16.mxu0 %v2205_v1 }
 0x34e   :  { %1863 = vmatpush3.bf16.msra.mxu0 %v2359_v15 }
 0x34f   :  { %1888 = vmatprep.subr.bf16.mxu0 %v2205_v1 }
 0x3e4   :  { %v635_v41 = vpop.f32.mrb[16].mxu0  ;;  %v689_v43 = vpop.f32.mrb[16].mxu1 }
 0x3e5   :  { %v2648_v44 = vadd.f32 %v2521_v42, %v635_v41  ;;  %v1786_v46 = vpop.f32.mrb[17].mxu0  ;;  %v1806_v47 = vpop.f32.mrb[17].mxu1 }
 0x3e6   :  { %v638_v48 = vpop.f32.mrb[18].mxu0  ;;  %v692_v49 = vpop.f32.mrb[18].mxu1 }
 0x3e7   :  { %v1807_v50 = vpop.f32.mrb[19].mxu1  ;;  %641 = vmax.xlane.f32.xlu1 %v2648_v44  ;;  %v1787_v51 = vpop.f32.mrb[19].mxu0 }
 0x404   :  { %v729_v52 = vpop.f32.mrb[20].mxu0 }
 0x405   :  { %v730_v53 = vadd.f32 %v729_v52, %v689_v43  ;;  %v1826_v54 = vpop.f32.mrb[21].mxu0 }
 0x406   :  { %v732_v55 = vpop.f32.mrb[22].mxu0  ;;  %v2792_v54 = vld [vmem:[%s2945_s2 + $0x8] sm:$0xff]  }
 0x407   :  { %v735_v56 = vadd.f32 %v2458_v29, %v730_v53  ;;  %v1827_v57 = vpop.f32.mrb[23].mxu0  ;;  %v2779_v53 = vld [vmem:[%s2945_s2] sm:$0xff]  }
 0x408   :  { %v2172_v55 = vld [vmem:[%s2946_s3 + $0x20] sm:$0xff]  }
 0x409   :  { %2123 = vtanh.f32 %v735_v56  ;;  %v2173_v56 = vld [vmem:[%s2946_s3 + $0x28] sm:$0xff]  }
 0x413   :  { %v2124_v58 = vpop.eup %2123 }
 0x414   :  { %v737_v59 = vpack.c.bf16 %v2124_v58, %v2124_v58 }
 0x416   :  { %1845 = vmatmul.mubr.bf16.vlgmr.msra.gmra.mrb[20].mxu1 %v737_v59  ;;  %1865 = vmatmul.mubr.bf16.vlgmr.msra.gmra.mrb[24].mxu0 %v737_v59 }
 0x417   :  { %1869 = vmatpush3.bf16.msra.mxu1 %v2265_v2  ;;  %1884 = vmatprep.mubr.msk.bf16.mxu1 %vm2206_vm0, %v2205_v1 }
 0x418   :  { %1870 = vmatprep.subr.bf16.mxu1 %v2205_v1  ;;  %1889 = vmatpush3.bf16.msra.mxu0 %v2376_v19 }
 0x419   :  { %1890 = vmatprep.subr.bf16.mxu0 %v2205_v1  ;;  %1904 = vmatprep.mubr.msk.bf16.mxu0 %vm2206_vm0, %v2205_v1 }
 0x41b   :  { %1871 = vmatpush3.bf16.msra.mxu1 %v2280_v4 }
 0x41c   :  { %1872 = vmatprep.subr.bf16.mxu1 %v2205_v1  ;;  %1891 = vmatpush3.bf16.msra.mxu0 %v2388_v21 }
 0x41d   :  { %1892 = vmatprep.subr.bf16.mxu0 %v2205_v1 }
 0x41f   :  { %1873 = vmatpush3.bf16.msra.mxu1 %v2296_v6 }
 0x420   :  { %1874 = vmatprep.subr.bf16.mxu1 %v2205_v1  ;;  %1893 = vmatpush3.bf16.msra.mxu0 %v2401_v22 }
 0x421   :  { %1894 = vmatprep.subr.bf16.mxu0 %v2205_v1 }
 0x423   :  { %1875 = vmatpush3.bf16.msra.mxu1 %v2310_v8 }
 0x424   :  { %1876 = vmatprep.subr.bf16.mxu1 %v2205_v1  ;;  %1895 = vmatpush3.bf16.msra.mxu0 %v2410_v23 }
 0x425   :  { %1896 = vmatprep.subr.bf16.mxu0 %v2205_v1 }
 0x427   :  { %1877 = vmatpush3.bf16.msra.mxu1 %v2324_v10 }
 0x428   :  { %1878 = vmatprep.subr.bf16.mxu1 %v2205_v1  ;;  %1897 = vmatpush3.bf16.msra.mxu0 %v2430_v24 }
 0x429   :  { %1898 = vmatprep.subr.bf16.mxu0 %v2205_v1 }
 0x42b   :  { %1879 = vmatpush3.bf16.msra.mxu1 %v2338_v12 }
 0x42c   :  { %1880 = vmatprep.subr.bf16.mxu1 %v2205_v1  ;;  %1899 = vmatpush3.bf16.msra.mxu0 %v2437_v25 }
 0x42d   :  { %1900 = vmatprep.subr.bf16.mxu0 %v2205_v1 }
 0x42f   :  { %1881 = vmatpush3.bf16.msra.mxu1 %v2352_v14 }
 0x430   :  { %1882 = vmatprep.subr.bf16.mxu1 %v2205_v1  ;;  %1901 = vmatpush3.bf16.msra.mxu0 %v2444_v26 }
 0x431   :  { %1902 = vmatprep.subr.bf16.mxu0 %v2205_v1 }
 0x433   :  { %1883 = vmatpush3.bf16.msra.mxu1 %v2369_v17 }
 0x434   :  { %1908 = vmatprep.subr.bf16.mxu1 %v2205_v1  ;;  %1903 = vmatpush3.bf16.msra.mxu0 %v2451_v27 }
 0x435   :  { %1928 = vmatprep.subr.bf16.mxu0 %v2205_v1 }
 0x436   :  { %1885 = vmatmul.mubr.bf16.vlgmr.msra.gmra.mrb[24].mxu1 %v1388_v60 }
 0x437   :  { %1909 = vmatpush3.bf16.msra.mxu1 %v2258_v0  ;;  %1924 = vmatprep.mubr.msk.bf16.mxu1 %vm2206_vm0, %v2205_v1 }
 0x438   :  { %1910 = vmatprep.subr.bf16.mxu1 %v2205_v1 }
 0x43b   :  { %1911 = vmatpush3.bf16.msra.mxu1 %v2271_v3 }
 0x43c   :  { %1912 = vmatprep.subr.bf16.mxu1 %v2205_v1 }
 0x43f   :  { %1913 = vmatpush3.bf16.msra.mxu1 %v2289_v5 }
 0x440   :  { %1914 = vmatprep.subr.bf16.mxu1 %v2205_v1 }
 0x443   :  { %1915 = vmatpush3.bf16.msra.mxu1 %v2303_v7 }
 0x444   :  { %1916 = vmatprep.subr.bf16.mxu1 %v2205_v1 }
 0x447   :  { %1917 = vmatpush3.bf16.msra.mxu1 %v2317_v9 }
 0x448   :  { %1918 = vmatprep.subr.bf16.mxu1 %v2205_v1 }
 0x44b   :  { %1919 = vmatpush3.bf16.msra.mxu1 %v2331_v11 }
 0x44c   :  { %1920 = vmatprep.subr.bf16.mxu1 %v2205_v1 }
 0x44f   :  { %1921 = vmatpush3.bf16.msra.mxu1 %v2344_v13 }
 0x450   :  { %1922 = vmatprep.subr.bf16.mxu1 %v2205_v1 }
 0x453   :  { %1923 = vmatpush3.bf16.msra.mxu1 %v2359_v15 }
 0x454   :  { %1948 = vmatprep.subr.bf16.mxu1 %v2205_v1 }
 0x4e9   :  { %v772_v61 = vpop.f32.mrb[20].mxu1  ;;  %v826_v62 = vpop.f32.mrb[24].mxu0 }
 0x4ea   :  { %v2710_v16 = vadd.f32 %v2521_v42, %v772_v61  ;;  %v1846_v18 = vpop.f32.mrb[21].mxu1  ;;  %v1866_v20 = vpop.f32.mrb[25].mxu0 }
 0x4eb   :  { %v775_v28 = vpop.f32.mrb[22].mxu1  ;;  %v829_v30 = vpop.f32.mrb[26].mxu0 }
 0x4ec   :  { %778 = vmax.xlane.f32.xlu1 %v2710_v16  ;;  %v1847_v31 = vpop.f32.mrb[23].mxu1  ;;  %v1867_v32 = vpop.f32.mrb[27].mxu0 }
 0x509   :  { %v866_v33 = vpop.f32.mrb[24].mxu1 }
 0x50a   :  { %v867_v34 = vadd.f32 %v866_v33, %v826_v62  ;;  %v1886_v35 = vpop.f32.mrb[25].mxu1 }
 0x50b   :  { %v869_v36 = vpop.f32.mrb[26].mxu1 }
 0x50c   :  { %v872_v37 = vadd.f32 %v2458_v29, %v867_v34  ;;  %v1887_v38 = vpop.f32.mrb[27].mxu1  ;;  %v2174_v36 = vld [vmem:[%s2948_s5] sm:$0xff]  }
 0x50e   :  { %2125 = vtanh.f32 %v872_v37  ;;  %v369_v37 = vpop.xlane.xlu0 %368 }
 0x50f   :  { %v370_v38 = vsub.f32 %v2524_v45, %v369_v37 }
 0x518   :  { %v2126_v39 = vpop.eup %2125 }
 0x519   :  { %v874_v40 = vpack.c.bf16 %v2126_v39, %v2126_v39  ;;  %v2915_v39 = vpop.xlane.xlu0 %504 }
 0x51b   :  { %1905 = vmatmul.mubr.bf16.vlgmr.msra.gmra.mrb[28].mxu0 %v874_v40  ;;  %1925 = vmatmul.mubr.bf16.vlgmr.msra.gmra.mrb[28].mxu1 %v874_v40  ;;  %v371_v40 = vmul.f32 1.442695, %v370_v38 }
 0x51c   :  { %1929 = vmatpush3.bf16.msra.mxu0 %v2265_v2  ;;  %1944 = vmatprep.mubr.msk.bf16.mxu0 %vm2206_vm0, %v2205_v1  ;;  %v1389_v2 = vld [vmem:[%s2944_s1 + $0x14] sm:$0xf] }
 0x51d   :  { %1930 = vmatprep.subr.bf16.mxu0 %v2205_v1  ;;  %1949 = vmatpush3.bf16.msra.mxu1 %v2376_v19 }
 0x51e   :  { %1950 = vmatprep.subr.bf16.mxu1 %v2205_v1  ;;  %1964 = vmatprep.mubr.msk.bf16.mxu1 %vm2206_vm0, %v2205_v1 }
 0x520   :  { %1931 = vmatpush3.bf16.msra.mxu0 %v2280_v4 }
 0x521   :  { %1932 = vmatprep.subr.bf16.mxu0 %v2205_v1  ;;  %1951 = vmatpush3.bf16.msra.mxu1 %v2388_v21 }
 0x522   :  { %1952 = vmatprep.subr.bf16.mxu1 %v2205_v1 }
 0x524   :  { %1933 = vmatpush3.bf16.msra.mxu0 %v2296_v6 }
 0x525   :  { %1934 = vmatprep.subr.bf16.mxu0 %v2205_v1  ;;  %1953 = vmatpush3.bf16.msra.mxu1 %v2401_v22 }
 0x526   :  { %1954 = vmatprep.subr.bf16.mxu1 %v2205_v1 }
 0x528   :  { %1935 = vmatpush3.bf16.msra.mxu0 %v2310_v8 }
 0x529   :  { %1936 = vmatprep.subr.bf16.mxu0 %v2205_v1  ;;  %1955 = vmatpush3.bf16.msra.mxu1 %v2410_v23 }
 0x52a   :  { %1956 = vmatprep.subr.bf16.mxu1 %v2205_v1 }
 0x52c   :  { %1937 = vmatpush3.bf16.msra.mxu0 %v2324_v10 }
 0x52d   :  { %1938 = vmatprep.subr.bf16.mxu0 %v2205_v1  ;;  %1957 = vmatpush3.bf16.msra.mxu1 %v2430_v24 }
 0x52e   :  { %1958 = vmatprep.subr.bf16.mxu1 %v2205_v1 }
 0x530   :  { %1939 = vmatpush3.bf16.msra.mxu0 %v2338_v12 }
 0x531   :  { %1940 = vmatprep.subr.bf16.mxu0 %v2205_v1  ;;  %1959 = vmatpush3.bf16.msra.mxu1 %v2437_v25 }
 0x532   :  { %1960 = vmatprep.subr.bf16.mxu1 %v2205_v1 }
 0x534   :  { %1941 = vmatpush3.bf16.msra.mxu0 %v2352_v14 }
 0x535   :  { %1942 = vmatprep.subr.bf16.mxu0 %v2205_v1  ;;  %1961 = vmatpush3.bf16.msra.mxu1 %v2444_v26 }
 0x536   :  { %1962 = vmatprep.subr.bf16.mxu1 %v2205_v1 }
 0x538   :  { %1943 = vmatpush3.bf16.msra.mxu0 %v2369_v17 }
 0x539   :  { %1968 = vmatprep.subr.bf16.mxu0 %v2205_v1  ;;  %1963 = vmatpush3.bf16.msra.mxu1 %v2451_v27 }
 0x53a   :  { %1988 = vmatprep.subr.bf16.mxu1 %v2205_v1 }
 0x53b   :  { %1945 = vmatmul.mubr.bf16.vlgmr.msra.gmra.mrb[32].mxu0 %v1389_v2 }
 0x53c   :  { %1969 = vmatpush3.bf16.msra.mxu0 %v2258_v0  ;;  %1984 = vmatprep.mubr.msk.bf16.mxu0 %vm2206_vm0, %v2205_v1 }
 0x53d   :  { %1970 = vmatprep.subr.bf16.mxu0 %v2205_v1 }
 0x540   :  { %1971 = vmatpush3.bf16.msra.mxu0 %v2271_v3 }
 0x541   :  { %1972 = vmatprep.subr.bf16.mxu0 %v2205_v1 }
 0x544   :  { %1973 = vmatpush3.bf16.msra.mxu0 %v2289_v5 }
 0x545   :  { %1974 = vmatprep.subr.bf16.mxu0 %v2205_v1 }
 0x548   :  { %1975 = vmatpush3.bf16.msra.mxu0 %v2303_v7 }
 0x549   :  { %1976 = vmatprep.subr.bf16.mxu0 %v2205_v1 }
 0x54c   :  { %1977 = vmatpush3.bf16.msra.mxu0 %v2317_v9 }
 0x54d   :  { %1978 = vmatprep.subr.bf16.mxu0 %v2205_v1 }
 0x550   :  { %1979 = vmatpush3.bf16.msra.mxu0 %v2331_v11 }
 0x551   :  { %1980 = vmatprep.subr.bf16.mxu0 %v2205_v1 }
 0x554   :  { %1981 = vmatpush3.bf16.msra.mxu0 %v2344_v13 }
 0x555   :  { %1982 = vmatprep.subr.bf16.mxu0 %v2205_v1 }
 0x558   :  { %1983 = vmatpush3.bf16.msra.mxu0 %v2359_v15 }
 0x559   :  { %2008 = vmatprep.subr.bf16.mxu0 %v2205_v1 }
 0x5ee   :  { %v909_v0 = vpop.f32.mrb[28].mxu0  ;;  %v963_v3 = vpop.f32.mrb[28].mxu1 }
 0x5ef   :  { %v2772_v4 = vadd.f32 %v2521_v42, %v909_v0  ;;  %v1906_v5 = vpop.f32.mrb[29].mxu0  ;;  %v1926_v6 = vpop.f32.mrb[29].mxu1 }
 0x5f0   :  { %v912_v7 = vpop.f32.mrb[30].mxu0  ;;  %v966_v9 = vpop.f32.mrb[30].mxu1 }
 0x5f1   :  { %v1927_v11 = vpop.f32.mrb[31].mxu1  ;;  %915 = vmax.xlane.f32.xlu0 %v2772_v4  ;;  %v1907_v41 = vpop.f32.mrb[31].mxu0 }
 0x60e   :  { %v1003_v43 = vpop.f32.mrb[32].mxu0 }
 0x60f   :  { %v1004_v46 = vadd.f32 %v1003_v43, %v963_v3  ;;  %v1946_v47 = vpop.f32.mrb[33].mxu0 }
 0x610   :  { %v1006_v48 = vpop.f32.mrb[34].mxu0 }
 0x611   :  { %v1009_v49 = vadd.f32 %v2458_v29, %v1004_v46  ;;  %v1947_v50 = vpop.f32.mrb[35].mxu0 }
 0x613   :  { %2127 = vtanh.f32 %v1009_v49 }
 0x61d   :  { %v2128_v51 = vpop.eup %2127 }
 0x61e   :  { %v1011_v52 = vpack.c.bf16 %v2128_v51, %v2128_v51 }
 0x620   :  { %1965 = vmatmul.mubr.bf16.vlgmr.msra.gmra.mrb[32].mxu1 %v1011_v52  ;;  %1985 = vmatmul.mubr.bf16.vlgmr.msra.gmra.mrb[36].mxu0 %v1011_v52  ;;  %v2180_v52 = vld [vmem:[%s2947_s4] ss:$0 sm:$0xff]  ;;  %s2207_s4 = smov [#allocation2]  }
 0x621   :  { %1989 = vmatpush3.bf16.msra.mxu1 %v2779_v53  ;;  %2004 = vmatprep.mubr.msk.bf16.mxu1 %vm2206_vm0, %v2205_v1 }
 0x622   :  { %1990 = vmatprep.subr.bf16.mxu1 %v2205_v1  ;;  %2009 = vmatpush3.bf16.msra.mxu0 %v2376_v19  ;;  %v2801_v19 = vld [vmem:[%s2945_s2 + $0x10] sm:$0xff]  }
 0x623   :  { %2010 = vmatprep.subr.bf16.mxu0 %v2205_v1  ;;  %2024 = vmatprep.mubr.msk.bf16.mxu0 %vm2206_vm0, %v2205_v1 }
 0x625   :  { %1991 = vmatpush3.bf16.msra.mxu1 %v2792_v54 }
 0x626   :  { %1992 = vmatprep.subr.bf16.mxu1 %v2205_v1  ;;  %2011 = vmatpush3.bf16.msra.mxu0 %v2388_v21 }
 0x627   :  { %2012 = vmatprep.subr.bf16.mxu0 %v2205_v1 }
 0x629   :  { %1993 = vmatpush3.bf16.msra.mxu1 %v2801_v19 }
 0x62a   :  { %1994 = vmatprep.subr.bf16.mxu1 %v2205_v1  ;;  %2013 = vmatpush3.bf16.msra.mxu0 %v2401_v22 }
 0x62b   :  { %2014 = vmatprep.subr.bf16.mxu0 %v2205_v1 }
 0x62d   :  { %1995 = vmatpush3.bf16.msra.mxu1 %v2310_v8  ;;  %v1390_v8 = vld [vmem:[%s2944_s1 + $0x18] sm:$0xf] }
 0x62e   :  { %1996 = vmatprep.subr.bf16.mxu1 %v2205_v1  ;;  %2015 = vmatpush3.bf16.msra.mxu0 %v2410_v23 }
 0x62f   :  { %2016 = vmatprep.subr.bf16.mxu0 %v2205_v1 }
 0x631   :  { %1997 = vmatpush3.bf16.msra.mxu1 %v2324_v10  ;;  %v2168_v10 = vld [vmem:[%s2946_s3] sm:$0xff]  }
 0x632   :  { %1998 = vmatprep.subr.bf16.mxu1 %v2205_v1  ;;  %2017 = vmatpush3.bf16.msra.mxu0 %v2430_v24 }
 0x633   :  { %2018 = vmatprep.subr.bf16.mxu0 %v2205_v1 }
 0x635   :  { %1999 = vmatpush3.bf16.msra.mxu1 %v2338_v12  ;;  %v2169_v12 = vld [vmem:[%s2946_s3 + $0x8] sm:$0xff]  }
 0x636   :  { %2000 = vmatprep.subr.bf16.mxu1 %v2205_v1  ;;  %2019 = vmatpush3.bf16.msra.mxu0 %v2437_v25 }
 0x637   :  { %2020 = vmatprep.subr.bf16.mxu0 %v2205_v1 }
 0x639   :  { %2001 = vmatpush3.bf16.msra.mxu1 %v2352_v14  ;;  %v2170_v14 = vld [vmem:[%s2946_s3 + $0x10] sm:$0xff]  }
 0x63a   :  { %2002 = vmatprep.subr.bf16.mxu1 %v2205_v1  ;;  %2021 = vmatpush3.bf16.msra.mxu0 %v2444_v26 }
 0x63b   :  { %2022 = vmatprep.subr.bf16.mxu0 %v2205_v1 }
 0x63d   :  { %2003 = vmatpush3.bf16.msra.mxu1 %v2369_v17  ;;  %v2171_v17 = vld [vmem:[%s2946_s3 + $0x18] sm:$0xff]  }
 0x63e   :  { %2028 = vmatprep.subr.bf16.mxu1 %v2205_v1  ;;  %2023 = vmatpush3.bf16.msra.mxu0 %v2451_v27 }
 0x63f   :  { %2048 = vmatprep.subr.bf16.mxu0 %v2205_v1 }
 0x640   :  { %2005 = vmatmul.mubr.bf16.vlgmr.msra.gmra.mrb[36].mxu1 %v1390_v8 }
 0x641   :  { %2029 = vmatpush3.bf16.msra.mxu1 %v2168_v10  ;;  %2044 = vmatprep.mubr.msk.bf16.mxu1 %vm2206_vm0, %v2205_v1 }
 0x642   :  { %2030 = vmatprep.subr.bf16.mxu1 %v2205_v1 }
 0x645   :  { %2031 = vmatpush3.bf16.msra.mxu1 %v2169_v12 }
 0x646   :  { %2032 = vmatprep.subr.bf16.mxu1 %v2205_v1 }
 0x649   :  { %2033 = vmatpush3.bf16.msra.mxu1 %v2170_v14 }
 0x64a   :  { %2034 = vmatprep.subr.bf16.mxu1 %v2205_v1 }
 0x64d   :  { %2035 = vmatpush3.bf16.msra.mxu1 %v2171_v17 }
 0x64e   :  { %2036 = vmatprep.subr.bf16.mxu1 %v2205_v1 }
 0x651   :  { %2037 = vmatpush3.bf16.msra.mxu1 %v2172_v55 }
 0x652   :  { %2038 = vmatprep.subr.bf16.mxu1 %v2205_v1 }
 0x655   :  { %2039 = vmatpush3.bf16.msra.mxu1 %v2173_v56 }
 0x656   :  { %2040 = vmatprep.subr.bf16.mxu1 %v2205_v1 }
 0x659   :  { %2041 = vmatpush3.bf16.msra.mxu1 %v2344_v13 }
 0x65a   :  { %2042 = vmatprep.subr.bf16.mxu1 %v2205_v1 }
 0x65d   :  { %2043 = vmatpush3.bf16.msra.mxu1 %v2359_v15 }
 0x65e   :  { %2068 = vmatprep.subr.bf16.mxu1 %v2205_v1 }
 0x67e   :  { %v916_v2 = vpop.xlane.xlu0 %915 }
 0x67f   :  { %v917_v3 = vsub.f32 %v2772_v4, %v916_v2 }
 0x681   :  { %v918_v5 = vmul.f32 1.442695, %v917_v3 }
 0x6f3   :  { %v1046_v57 = vpop.f32.mrb[32].mxu1  ;;  %v1100_v58 = vpop.f32.mrb[36].mxu0 }
 0x6f4   :  { %v2861_v59 = vadd.f32 %v2521_v42, %v1046_v57  ;;  %v1966_v60 = vpop.f32.mrb[33].mxu1  ;;  %v1986_v61 = vpop.f32.mrb[37].mxu0 }
 0x6f5   :  { %v1049_v62 = vpop.f32.mrb[34].mxu1  ;;  %v1103_v18 = vpop.f32.mrb[38].mxu0 }
 0x6f6   :  { %1052 = vmax.xlane.f32.xlu1 %v2861_v59  ;;  %v1967_v20 = vpop.f32.mrb[35].mxu1  ;;  %v1987_v28 = vpop.f32.mrb[39].mxu0 }
 0x713   :  { %v1140_v13 = vpop.f32.mrb[36].mxu1 }
 0x714   :  { %v1141_v30 = vadd.f32 %v1140_v13, %v1100_v58  ;;  %v2006_v31 = vpop.f32.mrb[37].mxu1 }
 0x715   :  { %v1143_v32 = vpop.f32.mrb[38].mxu1  ;;  %v506_v31 = vsub.f32 %v2586_v63, %v2915_v39 }
 0x716   :  { %v1146_v15 = vadd.f32 %v2458_v29, %v1141_v30  ;;  %v2007_v33 = vpop.f32.mrb[39].mxu1  ;;  %v2175_v29 = vld [vmem:[%s2945_s2 + $0x18] sm:$0xff]  }
 0x718   :  { %2129 = vtanh.f32 %v1146_v15  ;;  %v507_v15 = vmul.f32 1.442695, %v506_v31 }
 0x719   :  { %2131 = vpow2.f32 %v371_v40 }
 0x722   :  { %v2130_v34 = vpop.eup %2129 }
 0x723   :  { %v1148_v35 = vpack.c.bf16 %v2130_v34, %v2130_v34 }
 0x725   :  { %2025 = vmatmul.mubr.bf16.vlgmr.msra.gmra.mrb[40].mxu0 %v1148_v35  ;;  %2045 = vmatmul.mubr.bf16.vlgmr.msra.gmra.mrb[40].mxu1 %v1148_v35 }
 0x726   :  { %2049 = vmatpush3.bf16.msra.mxu0 %v2779_v53  ;;  %2064 = vmatprep.mubr.msk.bf16.mxu0 %vm2206_vm0, %v2205_v1 }
 0x727   :  { %2050 = vmatprep.subr.bf16.mxu0 %v2205_v1  ;;  %2069 = vmatpush3.bf16.msra.mxu1 %v2174_v36 }
 0x728   :  { %2070 = vmatprep.subr.bf16.mxu1 %v2205_v1  ;;  %2084 = vmatprep.mubr.msk.bf16.mxu1 %vm2206_vm0, %v2205_v1 }
 0x72a   :  { %2051 = vmatpush3.bf16.msra.mxu0 %v2792_v54 }
 0x72b   :  { %2052 = vmatprep.subr.bf16.mxu0 %v2205_v1  ;;  %2071 = vmatpush3.bf16.msra.mxu1 %v2388_v21  ;;  %v2176_v21 = vld [vmem:[%s2945_s2 + $0x20] sm:$0xff]  }
 0x72c   :  { %2072 = vmatprep.subr.bf16.mxu1 %v2205_v1 }
 0x72e   :  { %2053 = vmatpush3.bf16.msra.mxu0 %v2801_v19 }
 0x72f   :  { %2054 = vmatprep.subr.bf16.mxu0 %v2205_v1  ;;  %2073 = vmatpush3.bf16.msra.mxu1 %v2401_v22  ;;  %v2177_v22 = vld [vmem:[%s2945_s2 + $0x28] sm:$0xff]  }
 0x730   :  { %2074 = vmatprep.subr.bf16.mxu1 %v2205_v1 }
 0x732   :  { %2055 = vmatpush3.bf16.msra.mxu0 %v2175_v29 }
 0x733   :  { %2056 = vmatprep.subr.bf16.mxu0 %v2205_v1  ;;  %2075 = vmatpush3.bf16.msra.mxu1 %v2410_v23  ;;  %v2178_v23 = vld [vmem:[%s2945_s2 + $0x30] sm:$0xff]  }
 0x734   :  { %2076 = vmatprep.subr.bf16.mxu1 %v2205_v1 }
 0x736   :  { %2057 = vmatpush3.bf16.msra.mxu0 %v2176_v21 }
 0x737   :  { %2058 = vmatprep.subr.bf16.mxu0 %v2205_v1  ;;  %2077 = vmatpush3.bf16.msra.mxu1 %v2430_v24  ;;  %v2179_v24 = vld [vmem:[%s2945_s2 + $0x38] sm:$0xff]  }
 0x738   :  { %2078 = vmatprep.subr.bf16.mxu1 %v2205_v1 }
 0x73a   :  { %2059 = vmatpush3.bf16.msra.mxu0 %v2177_v22 }
 0x73b   :  { %2060 = vmatprep.subr.bf16.mxu0 %v2205_v1  ;;  %2079 = vmatpush3.bf16.msra.mxu1 %v2437_v25  ;;  %v1391_v25 = vld [vmem:[%s2944_s1 + $0x1c] sm:$0xf] }
 0x73c   :  { %2080 = vmatprep.subr.bf16.mxu1 %v2205_v1 }
 0x73e   :  { %2061 = vmatpush3.bf16.msra.mxu0 %v2178_v23 }
 0x73f   :  { %2062 = vmatprep.subr.bf16.mxu0 %v2205_v1  ;;  %2081 = vmatpush3.bf16.msra.mxu1 %v2444_v26  ;;  %v642_v26 = vpop.xlane.xlu1 %641 }
 0x740   :  { %2082 = vmatprep.subr.bf16.mxu1 %v2205_v1  ;;  %v643_v1 = vsub.f32 %v2648_v44, %v642_v26  ;;  %v2132_v44 = vpop.eup %2131 }
 0x742   :  { %2063 = vmatpush3.bf16.msra.mxu0 %v2179_v24  ;;  %v644_v0 = vmul.f32 1.442695, %v643_v1 }
 0x743   :  { %2083 = vmatpush3.bf16.msra.mxu1 %v2451_v27  ;;  %v779_v32 = vpop.xlane.xlu1 %778 }
 0x744   :  { %2133 = vpow2.f32 %v644_v0  ;;  %v780_v33 = vsub.f32 %v2710_v16, %v779_v32 }
 0x745   :  { %2065 = vmatmul.mubr.bf16.vlgmr.msra.gmra.mrb[44].mxu0 %v1391_v25  ;;  %2135 = vpow2.f32 %v918_v5 }
 0x746   :  { %v781_v35 = vmul.f32 1.442695, %v780_v33 }
 0x74e   :  { %v2134_v47 = vpop.eup %2133 }
 0x74f   :  { %v2136_v48 = vpop.eup %2135 }
 0x783   :  { %v1053_v34 = vpop.xlane.xlu1 %1052 }
 0x784   :  { %v1054_v36 = vsub.f32 %v2861_v59, %v1053_v34 }
 0x786   :  { %v1055_v29 = vmul.f32 1.442695, %v1054_v36 }
 0x7f8   :  { %v1183_v6 = vpop.f32.mrb[40].mxu0  ;;  %v1237_v7 = vpop.f32.mrb[40].mxu1 }
 0x7f9   :  { %v1184_v27 = vadd.f32 %v2521_v42, %v1183_v6  ;;  %v2026_v9 = vpop.f32.mrb[41].mxu0  ;;  %v2046_v11 = vpop.f32.mrb[41].mxu1 }
 0x7fa   :  { %v1186_v45 = vpop.f32.mrb[42].mxu0  ;;  %v1240_v41 = vpop.f32.mrb[42].mxu1 }
 0x7fb   :  { %v2047_v43 = vpop.f32.mrb[43].mxu1  ;;  %1189 = vmax.xlane.f32.xlu0 %v1184_v27  ;;  %v2027_v46 = vpop.f32.mrb[43].mxu0 }
 0x7ff   :  { %373 = vadd.xlane.f32.xlu0 %v2132_v44 }
 0x803   :  { %646 = vadd.xlane.f32.xlu0 %v2134_v47 }
 0x807   :  { %920 = vadd.xlane.f32.xlu0 %v2136_v48 }
 0x818   :  { %v1277_v4 = vpop.f32.mrb[44].mxu0 }
 0x819   :  { %v1278_v49 = vadd.f32 %v1277_v4, %v1237_v7  ;;  %v2066_v50 = vpop.f32.mrb[45].mxu0 }
 0x81a   :  { %v1280_v51 = vpop.f32.mrb[46].mxu0 }
 0x81b   :  { %v1283_v53 = vadd.f32 %v2180_v52, %v1278_v49  ;;  %v2067_v54 = vpop.f32.mrb[47].mxu0 }
 0x81d   :  { %2137 = vtanh.f32 %v1283_v53 }
 0x827   :  { %v2138_v19 = vpop.eup %2137 }
 0x828   :  { %1338 = vst [vmem:[%s2951_s8] sm:$0xff] %v2138_v19  ;;  %v1285_v8 = vpack.c.bf16 %v2138_v19, %v2138_v19  ;;  %s1344_s8 = sshll.u32 %s2207_s4, 4  ;;  %s1345_s8 = int_to_ptr.vmem [resolvable:$true] %s1344_s8 }
 0x829   :  { %s2181_s12 = scalar_lea.vmem %s1345_s8, 1024  ;;  %p2186_p1 = scmp.lt.s32.totalorder %s1345_s8, %s1345_s8 }
 0x82a   :  { %2085 = vmatmul.mubr.bf16.vlgmr.msra.gmra.mrb[44].mxu1 %v1285_v8  ;;  %p2182_p0 = scmp.ne.s32.totalorder %s1345_s8, %s2181_s12  ;;  %p2187_p2 = scmp.lt.s32.totalorder %s2181_s12, %s2181_s12 }
 0x82c   :  { %p2188_p3 = por %p2187_p2, %p2186_p1 }
 0x82e   :  { %p2189_p4 = pnand %p2188_p3, %p2182_p0 }
 0x888   :  { %v1190_v10 = vpop.xlane.xlu0 %1189 }
 0x889   :  { %v1191_v12 = vsub.f32 %v1184_v27, %v1190_v10 }
 0x88b   :  { %v1192_v14 = vmul.f32 1.442695, %v1191_v12 }
 0x88c   :  { %v374_v17 = vpop.xlane.xlu0 %373 }
 0x88d   :  { %2139 = vpow2.f32 %v1192_v14 }
 0x88e   :  { %2141 = vlog2.f32 %v374_v17 }
 0x890   :  { %v647_v55 = vpop.xlane.xlu0 %646 }
 0x891   :  { %2143 = vlog2.f32 %v647_v55 }
 0x894   :  { %v921_v56 = vpop.xlane.xlu0 %920 }
 0x895   :  { %2145 = vlog2.f32 %v921_v56 }
 0x896   :  { %2147 = vpow2.f32 %v507_v15 }
 0x897   :  { %v2140_v57 = vpop.eup %2139  ;;  %2149 = vpow2.f32 %v781_v35 }
 0x898   :  { %v2142_v58 = vpop.eup %2141  ;;  %1194 = vadd.xlane.f32.xlu0 %v2140_v57  ;;  %2151 = vpow2.f32 %v1055_v29 }
 0x899   :  { %v376_v60 = vmul.f32 0.6931472, %v2142_v58 }
 0x89b   :  { %v2144_v61 = vpop.eup %2143  ;;  %v377_v62 = vsub.f32 %v370_v38, %v376_v60 }
 0x89c   :  { %v649_v18 = vmul.f32 0.6931472, %v2144_v61 }
 0x89d   :  { %378 = vst [vmem:[#allocation2] sm:$0xff] %v377_v62 }
 0x89e   :  { %v650_v20 = vsub.f32 %v643_v1, %v649_v18 }
 0x89f   :  { %v2146_v28 = vpop.eup %2145 }
 0x8a0   :  { %652 = vst [vmem:[#allocation2 + $0x10] sm:$0xff] %v650_v20  ;;  %v923_v13 = vmul.f32 0.6931472, %v2146_v28  ;;  %v2148_v63 = vpop.eup %2147 }
 0x8a1   :  { %v2150_v37 = vpop.eup %2149 }
 0x8a2   :  { %v924_v30 = vsub.f32 %v917_v3, %v923_v13  ;;  %v2152_v16 = vpop.eup %2151 }
 0x8a4   :  { %926 = vst [vmem:[#allocation2 + $0x20] sm:$0xff] %v924_v30 }
 0x8fd   :  { %v1320_v21 = vpop.f32.mrb[44].mxu1 }
 0x8fe   :  { %v1321_v22 = vadd.f32 %v2521_v42, %v1320_v21  ;;  %v2086_v23 = vpop.f32.mrb[45].mxu1 }
 0x8ff   :  { %v1323_v24 = vpop.f32.mrb[46].mxu1 }
 0x900   :  { %1326 = vmax.xlane.f32.xlu1 %v1321_v22  ;;  %v2087_v25 = vpop.f32.mrb[47].mxu1 }
 0x904   :  { %509 = vadd.xlane.f32.xlu1 %v2148_v63 }
 0x908   :  { %783 = vadd.xlane.f32.xlu1 %v2150_v37 }
 0x90c   :  { %1057 = vadd.xlane.f32.xlu1 %v2152_v16 }
 0x925   :  { %v1195_v38 = vpop.xlane.xlu0 %1194 }
 0x926   :  { %2153 = vlog2.f32 %v1195_v38 }
 0x930   :  { %v2154_v39 = vpop.eup %2153 }
 0x931   :  { %v1197_v59 = vmul.f32 0.6931472, %v2154_v39 }
 0x933   :  { %v1198_v26 = vsub.f32 %v1191_v12, %v1197_v59 }
 0x935   :  { %1200 = vst [vmem:[#allocation2 + $0x30] sm:$0xff] %v1198_v26 }
 0x98d   :  { %v1327_v40 = vpop.xlane.xlu1 %1326 }
 0x98e   :  { %v1328_v1 = vsub.f32 %v1321_v22, %v1327_v40 }
 0x990   :  { %v1329_v42 = vmul.f32 1.442695, %v1328_v1 }
 0x991   :  { %v510_v2 = vpop.xlane.xlu1 %509 }
 0x992   :  { %2155 = vpow2.f32 %v1329_v42 }
 0x993   :  { %2157 = vlog2.f32 %v510_v2 }
 0x995   :  { %v784_v0 = vpop.xlane.xlu1 %783 }
 0x996   :  { %2159 = vlog2.f32 %v784_v0 }
 0x999   :  { %v1058_v3 = vpop.xlane.xlu1 %1057 }
 0x99a   :  { %2161 = vlog2.f32 %v1058_v3 }
 0x99c   :  { %v2156_v5 = vpop.eup %2155 }
 0x99d   :  { %v2158_v6 = vpop.eup %2157  ;;  %1331 = vadd.xlane.f32.xlu1 %v2156_v5 }
 0x99e   :  { %v512_v7 = vmul.f32 0.6931472, %v2158_v6 }
 0x9a0   :  { %v2160_v27 = vpop.eup %2159  ;;  %v513_v9 = vsub.f32 %v506_v31, %v512_v7 }
 0x9a1   :  { %v786_v11 = vmul.f32 0.6931472, %v2160_v27 }
 0x9a2   :  { %515 = vst [vmem:[#allocation2 + $0x8] sm:$0xff] %v513_v9 }
 0x9a3   :  { %v787_v45 = vsub.f32 %v780_v33, %v786_v11 }
 0x9a4   :  { %v2162_v41 = vpop.eup %2161 }
 0x9a5   :  { %789 = vst [vmem:[#allocation2 + $0x18] sm:$0xff] %v787_v45  ;;  %v1060_v43 = vmul.f32 0.6931472, %v2162_v41 }
 0x9a7   :  { %v1061_v46 = vsub.f32 %v1054_v36, %v1060_v43 }
 0x9a9   :  { %1063 = vst [vmem:[#allocation2 + $0x28] sm:$0xff] %v1061_v46 }
 0xa2a   :  { %v1332_v44 = vpop.xlane.xlu1 %1331 }
 0xa2b   :  { %2163 = vlog2.f32 %v1332_v44 }
 0xa35   :  { %v2164_v47 = vpop.eup %2163 }
 0xa36   :  { %v1334_v48 = vmul.f32 0.6931472, %v2164_v47 }
 0xa38   :  { %v1335_v4 = vsub.f32 %v1328_v1, %v1334_v48 }
 0xa3a   :  { %1337 = vst [vmem:[#allocation2 + $0x38] sm:$0xff] %v1335_v4 }
 0xa3b   :  { %2192 = shalt.err (!%p2189_p4)
}
 0xa3c   :  { %s2193_s15 = scalar_lea.hbm %s2950_s7, 1024 }
 0xa3d   :  { %p2194_p5 = scmp.ne.s32.totalorder %s2950_s7, %s2193_s15  ;;  %p2197_p6 = scmp.lt.u32.totalorder %s2193_s15, %s2950_s7 }
 0xa3f   :  { %p2199_p7 = pnand %p2197_p6, %p2194_p5 }
 0xa41   :  { %2202 = shalt.err (!%p2199_p7)
}
 0xa42   :  { %s2208_s0 = smov 128   ;;  %s2209_s19 = smov 8  }
 0xa43   :  { %1350 = dma.vmem_to_hbm [thread:$0]  %s1345_s8, 1024, %s2950_s7, [#allocation3], %s2208_s0, %s2208_s0, %s2209_s19  }
 0xa44   :  { %2203 = dma.done.wait [#allocation3], 1024  }
 0xa45   :  { %2204 = vsyncadd [#allocation3], 4294966272 }
 0xa46   :  { %1358 = vsyncpa [#allocation3], 1 }

</bundles_post_ra>
